<compile_context>
chip_gen: v7x
topology: tpu7x:2x2x1
jax: 0.10.0
libtpu: 0.0.40
codegen_flags: <defaults>
</compile_context>

<pallas_src>
import jax
import jax.numpy as jnp
from jax.experimental import pallas as pl
from jax.experimental.pallas import tpu as pltpu


# ----------------------------- Pallas kernels ------------------------------

def _conv_bias_relu_pool_kernel(p_ref, w_ref, b_ref, o_ref):
    """Fused conv-GEMM + bias + ReLU + 2x2 max-pool for one batch tile.

    p_ref : (1, 4, K, L)  bf16   four pool-tap im2col matrices, L = B*S
    w_ref : (Cout, K)     bf16   weights, channel-major
    b_ref : (Cout, 1)     f32    bias
    o_ref : (1, Cout, L)         pooled activations (channel-major, batch in lanes)
    """
    w = w_ref[...]
    # Four independent MXU matmuls (no serial max between pushes), then a
    # max tree.  Max-before-bias/ReLU == conv->bias->ReLU->maxpool (see header).
    d0 = jnp.dot(w, p_ref[0, 0], preferred_element_type=jnp.float32)
    d1 = jnp.dot(w, p_ref[0, 1], preferred_element_type=jnp.float32)
    d2 = jnp.dot(w, p_ref[0, 2], preferred_element_type=jnp.float32)
    d3 = jnp.dot(w, p_ref[0, 3], preferred_element_type=jnp.float32)
    acc = jnp.maximum(jnp.maximum(d0, d1), jnp.maximum(d2, d3))
    o_ref[0] = jnp.maximum(acc + b_ref[...], 0.0).astype(o_ref.dtype)


def _fc_fused_kernel(x_ref, w1_ref, b1_ref, w2_ref, b2_ref, lp_ref, fc1_ref):
    """fc1 + ReLU + fc2 + log_softmax, fused."""
    h = jnp.dot(x_ref[...], w1_ref[...], preferred_element_type=jnp.float32)
    h = jnp.maximum(h + b1_ref[...], 0.0)                       # (tm, 128) f32
    fc1_ref[...] = h.astype(fc1_ref.dtype)
    logits = jnp.dot(h.astype(w2_ref.dtype), w2_ref[...],
                     preferred_element_type=jnp.float32) + b2_ref[...]
    m = jnp.max(logits, axis=-1, keepdims=True)
    s = logits - m
    lse = jnp.log(jnp.sum(jnp.exp(s), axis=-1, keepdims=True))
    lp_ref[...] = s - lse


# ------------------------------ kernel wrappers -----------------------------

def conv_relu_pool(patches, w, b, out_dtype=jnp.bfloat16):
    """Channel-major fused conv+bias+ReLU+2x2pool over batch tiles.

    patches: (G, 4, K, L) bf16 with L = B*S (batch folded into the lane dim)
    w: (Cout, K) bf16, b: (Cout,) f32.  Returns (G, Cout, L) in `out_dtype`.
    """
    G, T, K, L = patches.shape
    Cout = w.shape[0]
    b2 = b.reshape(Cout, 1).astype(jnp.float32)
    # VMEM per step (double-buffered) stays ~10 MB for B=32 (conv2), well
    # under the 32 MiB default scoped limit on all generations incl. v7x,
    # so no explicit vmem_limit_bytes is needed.
    return pl.pallas_call(
        _conv_bias_relu_pool_kernel,
        grid=(G,),
        in_specs=[
            pl.BlockSpec((1, T, K, L), lambda g: (g, 0, 0, 0)),
            pl.BlockSpec((Cout, K), lambda g: (0, 0)),
            pl.BlockSpec((Cout, 1), lambda g: (0, 0)),
        ],
        out_specs=pl.BlockSpec((1, Cout, L), lambda g: (g, 0, 0)),
        out_shape=jax.ShapeDtypeStruct((G, Cout, L), out_dtype),
        compiler_params=pltpu.CompilerParams(
            dimension_semantics=("parallel",)),
    )(patches, w, b2)


def _batch_tile(N, cap=32):
    """Largest divisor of N <= cap that still leaves >= 2 grid steps (v7x)."""
    best = 1
    for b in range(1, min(cap, N) + 1):
        if N % b == 0 and N // b >= 2:
            best = b
    return best


def _row_tile(M, cap=512):
    """Multiple-of-8 divisor of M (<= cap), preferring >= 2 blocks (v7x 2 TCs)."""
    for hi in (min(cap, M // 2), min(cap, M)):
        for tm in range(hi, 7, -1):
            if M % tm == 0 and tm % 8 == 0:
                return tm
    return M


def fc_fused(x, w1, b1, w2, b2):
    """(log_softmax(relu(x@w1+b1)@w2+b2), relu(x@w1+b1)); x:(M,K) bf16."""
    M, K = x.shape
    H = w1.shape[1]
    C = w2.shape[1]
    tm = _row_tile(M)
    return pl.pallas_call(
        _fc_fused_kernel,
        grid=(M // tm,),
        in_specs=[
            pl.BlockSpec((tm, K), lambda i: (i, 0)),
            pl.BlockSpec((K, H), lambda i: (0, 0)),
            pl.BlockSpec((1, H), lambda i: (0, 0)),
            pl.BlockSpec((H, C), lambda i: (0, 0)),
            pl.BlockSpec((1, C), lambda i: (0, 0)),
        ],
        out_specs=[
            pl.BlockSpec((tm, C), lambda i: (i, 0)),
            pl.BlockSpec((tm, H), lambda i: (i, 0)),
        ],
        out_shape=(jax.ShapeDtypeStruct((M, C), jnp.float32),
                   jax.ShapeDtypeStruct((M, H), jnp.float32)),
        compiler_params=pltpu.CompilerParams(
            dimension_semantics=("parallel",)),
    )(x, w1, b1.reshape(1, H).astype(jnp.float32),
      w2, b2.reshape(1, C).astype(jnp.float32))


# ------------------------------- glue (JAX) ---------------------------------

def conv_pool_patches(x_nchw, batch_tile, ksize=5, pad=2, pool=2):
    """Pool-tap im2col, channel-major, batch folded into the lane axis.

    x_nchw: (N, C, H, W).  Returns (G, pool*pool, C*k*k, B*Hp*Wp) where
    G = N // batch_tile, row index k = c*k*k + dh*k + dw (matches an OIHW
    weight reshaped to (O, C*k*k)), lane index = b*(Hp*Wp) + pi*Wp + pj and
    tap t = r*pool + s such that
      out[g, t, k, b*S + pi*Wp + pj]
        = pad(x)[g*B + b, c, pool*pi + r + dh, pool*pj + s + dw].
    """
    N, C, H, W = x_nchw.shape
    Hp, Wp = H // pool, W // pool
    S = Hp * Wp
    K = C * ksize * ksize
    B = batch_tile
    G = N // B
    xp = jnp.pad(x_nchw, ((0, 0), (0, 0), (pad, pad), (pad, pad)))
    cols = jnp.stack(
        [xp[:, :, dh:dh + H, dw:dw + W]
         for dh in range(ksize) for dw in range(ksize)], axis=2)  # (N,C,KK,H,W)
    cols = cols.reshape(N, K, H, W)
    taps = jnp.stack(
        [cols[:, :, r::pool, s::pool]
         for r in range(pool) for s in range(pool)], axis=1)      # (N,4,K,Hp,Wp)
    taps = taps.reshape(G, B, pool * pool, K, S)
    taps = taps.transpose(0, 2, 3, 1, 4)                          # (G,4,K,B,S)
    return taps.reshape(G, pool * pool, K, B * S)


def init_params(key):
    ks = jax.random.split(key, 8)

    def lin(k, shape, fan_in):
        return jax.random.normal(k, shape, jnp.float32) / jnp.sqrt(fan_in)

    return {
        "conv1_w": lin(ks[0], (16, 1, 5, 5), 1 * 25),      # PyTorch OIHW
        "conv1_b": lin(ks[1], (16,), 1 * 25),
        "conv2_w": lin(ks[2], (32, 16, 5, 5), 16 * 25),
        "conv2_b": lin(ks[3], (32,), 16 * 25),
        "fc1_w":   lin(ks[4], (128, 32 * 7 * 7), 32 * 7 * 7),   # (out, in)
        "fc1_b":   lin(ks[5], (128,), 32 * 7 * 7),
        "fc2_w":   lin(ks[6], (10, 128), 128),
        "fc2_b":   lin(ks[7], (10,), 128),
    }


def cnn_forward(x_nchw, params):
    N = x_nchw.shape[0]
    cdt = jnp.bfloat16
    B = _batch_tile(N)          # images per conv grid step
    G = N // B

    x = x_nchw.astype(cdt)                                  # (N, 1, 28, 28)

    # conv1 (1 -> 16, 5x5, pad 2) + ReLU + 2x2 maxpool, fused in one kernel
    p1 = conv_pool_patches(x, B)                            # (G, 4, 25, B*196)
    w1 = params["conv1_w"].reshape(16, 25).astype(cdt)      # (Cout, K)
    y1 = conv_relu_pool(p1, w1, params["conv1_b"])          # (G, 16, B*196) bf16
    y1_map = (y1.reshape(G, 16, B, 14, 14)
                .transpose(0, 2, 1, 3, 4)
                .reshape(N, 16, 14, 14))                    # NCHW feature map

    # conv2 (16 -> 32, 5x5, pad 2) + ReLU + 2x2 maxpool, fused
    p2 = conv_pool_patches(y1_map, B)                       # (G, 4, 400, B*49)
    w2 = params["conv2_w"].reshape(32, 400).astype(cdt)
    y2 = conv_relu_pool(p2, w2, params["conv2_b"])          # (G, 32, B*49) bf16

    # channel-major per-image layout => flatten matches PyTorch view(N, -1)
    feat = (y2.reshape(G, 32, B, 49)
              .transpose(0, 2, 1, 3)
              .reshape(N, 32 * 7 * 7))                      # (N, 1568) bf16

    # fc1 + ReLU + fc2 + log_softmax (dim=1), fused in one kernel
    fw1 = params["fc1_w"].T.astype(cdt)                     # (1568, 128)
    fw2 = params["fc2_w"].T.astype(cdt)                     # (128, 10)
    log_probs, fc1_out = fc_fused(feat, fw1, params["fc1_b"],
                                  fw2, params["fc2_b"])
    return log_probs, fc1_out


# --------------------------- pure-JAX f32 reference --------------------------

def reference_forward(x, params):
    dn = ("NCHW", "OIHW", "NCHW")
    y = jax.lax.conv_general_dilated(x, params["conv1_w"], (1, 1),
                                     ((2, 2), (2, 2)), dimension_numbers=dn)
    y = jax.nn.relu(y + params["conv1_b"][None, :, None, None])
    y = jax.lax.reduce_window(y, -jnp.inf, jax.lax.max,
                              (1, 1, 2, 2), (1, 1, 2, 2), "VALID")
    y = jax.lax.conv_general_dilated(y, params["conv2_w"], (1, 1),
                                     ((2, 2), (2, 2)), dimension_numbers=dn)
    y = jax.nn.relu(y + params["conv2_b"][None, :, None, None])
    y = jax.lax.reduce_window(y, -jnp.inf, jax.lax.max,
                              (1, 1, 2, 2), (1, 1, 2, 2), "VALID")
    res = y.reshape(y.shape[0], -1)
    h = jax.nn.relu(res @ params["fc1_w"].T + params["fc1_b"])
    logits = h @ params["fc2_w"].T + params["fc2_b"]
    return jax.nn.log_softmax(logits, axis=-1), h


if __name__ == "__main__":
    key = jax.random.PRNGKey(0)
    k_x, k_p = jax.random.split(key)
    # The forward pass implies 28x28 single-channel input (fc1 expects 32*7*7).
    x = jax.random.normal(k_x, (2, 1, 28, 28), jnp.float32)
    params = init_params(k_p)

    log_probs, fc1_out = jax.jit(cnn_forward)(x, params)
    jax.block_until_ready((log_probs, fc1_out))

    assert log_probs.shape == (2, 10) and fc1_out.shape == (2, 128)
    # log_softmax rows must exponentiate-and-sum to ~1
    assert jnp.allclose(jnp.sum(jnp.exp(log_probs), axis=-1), 1.0, atol=1e-4)

    # Compare against a pure-JAX f32 reference (bf16 GEMM operands => loose tol).
    lp_ref, fc1_ref = jax.jit(reference_forward)(x, params)
    assert float(jnp.max(jnp.abs(log_probs - lp_ref))) < 0.2, "log_probs mismatch"
    assert float(jnp.max(jnp.abs(fc1_out - fc1_ref))) < 0.2, "fc1_out mismatch"

    print("KERNEL_OK")
</pallas_src>

<mosaic_0001>
module attributes {stable_mosaic.version = 11 : i64} {
  func.func @_conv_bias_relu_pool_kernel(%arg0: i32, %arg1: memref<1x4x25x196xbf16, #tpu.memory_space<vmem>>, %arg2: memref<16x25xbf16, #tpu.memory_space<vmem>>, %arg3: memref<16x1xf32, #tpu.memory_space<vmem>>, %arg4: memref<1x16x196xbf16, #tpu.memory_space<vmem>>) attributes {dimension_semantics = [#tpu.dimension_semantics<parallel>], iteration_bounds = array<i64: 2>, scalar_prefetch = 0 : i64, scratch_operands = 0 : i64, tpu.core_type = #tpu.core_type<tc>, window_params = [{transform_indices = @transform_0, window_bounds = array<i64: 1, 4, 25, 196>}, {pipeline_mode = #tpu.pipeline_mode<synchronous>, transform_indices = @transform_1, window_bounds = array<i64: 16, 25>}, {pipeline_mode = #tpu.pipeline_mode<synchronous>, transform_indices = @transform_2, window_bounds = array<i64: 16, 1>}, {transform_indices = @transform_3, window_bounds = array<i64: 1, 16, 196>}]} {
    %c0 = arith.constant 0 : index
    %c0_0 = arith.constant 0 : index
    %0 = vector.load %arg2[%c0, %c0_0] : memref<16x25xbf16, #tpu.memory_space<vmem>>, vector<16x25xbf16>
    %c0_1 = arith.constant 0 : index
    %c0_2 = arith.constant 0 : index
    %c0_3 = arith.constant 0 : index
    %c0_4 = arith.constant 0 : index
    %1 = vector.load %arg1[%c0_1, %c0_2, %c0_3, %c0_4] : memref<1x4x25x196xbf16, #tpu.memory_space<vmem>>, vector<1x1x25x196xbf16>
    %2 = vector.shape_cast %1 : vector<1x1x25x196xbf16> to vector<25x196xbf16>
    %cst = arith.constant dense<0.000000e+00> : vector<16x196xf32>
    %3 = tpu.matmul %0, %2, %cst {dimension_numbers = #tpu.dot_dimension_numbers<[1], [0], [0], [1], [0, 0, 1, 1], [], []>} : vector<16x25xbf16>, vector<25x196xbf16>, vector<16x196xf32> -> vector<16x196xf32>
    %c0_5 = arith.constant 0 : index
    %c1 = arith.constant 1 : index
    %c0_6 = arith.constant 0 : index
    %c0_7 = arith.constant 0 : index
    %4 = vector.load %arg1[%c0_5, %c1, %c0_6, %c0_7] : memref<1x4x25x196xbf16, #tpu.memory_space<vmem>>, vector<1x1x25x196xbf16>
    %5 = vector.shape_cast %4 : vector<1x1x25x196xbf16> to vector<25x196xbf16>
    %cst_8 = arith.constant dense<0.000000e+00> : vector<16x196xf32>
    %6 = tpu.matmul %0, %5, %cst_8 {dimension_numbers = #tpu.dot_dimension_numbers<[1], [0], [0], [1], [0, 0, 1, 1], [], []>} : vector<16x25xbf16>, vector<25x196xbf16>, vector<16x196xf32> -> vector<16x196xf32>
    %c0_9 = arith.constant 0 : index
    %c2 = arith.constant 2 : index
    %c0_10 = arith.constant 0 : index
    %c0_11 = arith.constant 0 : index
    %7 = vector.load %arg1[%c0_9, %c2, %c0_10, %c0_11] : memref<1x4x25x196xbf16, #tpu.memory_space<vmem>>, vector<1x1x25x196xbf16>
    %8 = vector.shape_cast %7 : vector<1x1x25x196xbf16> to vector<25x196xbf16>
    %cst_12 = arith.constant dense<0.000000e+00> : vector<16x196xf32>
    %9 = tpu.matmul %0, %8, %cst_12 {dimension_numbers = #tpu.dot_dimension_numbers<[1], [0], [0], [1], [0, 0, 1, 1], [], []>} : vector<16x25xbf16>, vector<25x196xbf16>, vector<16x196xf32> -> vector<16x196xf32>
    %c0_13 = arith.constant 0 : index
    %c3 = arith.constant 3 : index
    %c0_14 = arith.constant 0 : index
    %c0_15 = arith.constant 0 : index
    %10 = vector.load %arg1[%c0_13, %c3, %c0_14, %c0_15] : memref<1x4x25x196xbf16, #tpu.memory_space<vmem>>, vector<1x1x25x196xbf16>
    %11 = vector.shape_cast %10 : vector<1x1x25x196xbf16> to vector<25x196xbf16>
    %cst_16 = arith.constant dense<0.000000e+00> : vector<16x196xf32>
    %12 = tpu.matmul %0, %11, %cst_16 {dimension_numbers = #tpu.dot_dimension_numbers<[1], [0], [0], [1], [0, 0, 1, 1], [], []>} : vector<16x25xbf16>, vector<25x196xbf16>, vector<16x196xf32> -> vector<16x196xf32>
    %13 = arith.maximumf %3, %6 : vector<16x196xf32>
    %14 = arith.maximumf %9, %12 : vector<16x196xf32>
    %15 = arith.maximumf %13, %14 : vector<16x196xf32>
    %c0_17 = arith.constant 0 : index
    %c0_18 = arith.constant 0 : index
    %16 = vector.load %arg3[%c0_17, %c0_18] : memref<16x1xf32, #tpu.memory_space<vmem>>, vector<16x1xf32>
    %17 = vector.broadcast %16 : vector<16x1xf32> to vector<16x196xf32>
    %18 = arith.addf %15, %17 : vector<16x196xf32>
    %cst_19 = arith.constant 0.000000e+00 : f32
    %19 = vector.broadcast %cst_19 : f32 to vector<16x196xf32>
    %20 = arith.maximumf %18, %19 : vector<16x196xf32>
    %21 = arith.truncf %20 : vector<16x196xf32> to vector<16x196xbf16>
    %c0_20 = arith.constant 0 : index
    %c0_21 = arith.constant 0 : index
    %c0_22 = arith.constant 0 : index
    %22 = vector.load %arg4[%c0_20, %c0_21, %c0_22] : memref<1x16x196xbf16, #tpu.memory_space<vmem>>, vector<1x16x196xbf16>
    %23 = vector.shape_cast %22 : vector<1x16x196xbf16> to vector<16x196xbf16>
    %24 = vector.shape_cast %21 : vector<16x196xbf16> to vector<1x16x196xbf16>
    tpu.vector_store %arg4[%c0_20, %c0_21, %c0_22], %24 {strides = array<i32>} : memref<1x16x196xbf16, #tpu.memory_space<vmem>>, vector<1x16x196xbf16>,
    return
  }
  func.func @transform_0(%arg0: i32) -> (i32, i32, i32, i32) {
    %c0_i32 = arith.constant 0 : i32
    %c0_i32_0 = arith.constant 0 : i32
    %c0_i32_1 = arith.constant 0 : i32
    %c0_i32_2 = arith.constant 0 : i32
    return %arg0, %c0_i32, %c0_i32_0, %c0_i32_1 : i32, i32, i32, i32
  }
  func.func @transform_1(%arg0: i32) -> (i32, i32) {
    %c0_i32 = arith.constant 0 : i32
    %c0_i32_0 = arith.constant 0 : i32
    %c0_i32_1 = arith.constant 0 : i32
    return %c0_i32, %c0_i32_0 : i32, i32
  }
  func.func @transform_2(%arg0: i32) -> (i32, i32) {
    %c0_i32 = arith.constant 0 : i32
    %c0_i32_0 = arith.constant 0 : i32
    %c0_i32_1 = arith.constant 0 : i32
    return %c0_i32, %c0_i32_0 : i32, i32
  }
  func.func @transform_3(%arg0: i32) -> (i32, i32, i32) {
    %c0_i32 = arith.constant 0 : i32
    %c0_i32_0 = arith.constant 0 : i32
    %c0_i32_1 = arith.constant 0 : i32
    return %arg0, %c0_i32, %c0_i32_0 : i32, i32, i32
  }
}

module attributes {stable_mosaic.version = 11 : i64} {
  func.func @_conv_bias_relu_pool_kernel(%arg0: i32, %arg1: memref<1x4x400x49xbf16, #tpu.memory_space<vmem>>, %arg2: memref<32x400xbf16, #tpu.memory_space<vmem>>, %arg3: memref<32x1xf32, #tpu.memory_space<vmem>>, %arg4: memref<1x32x49xbf16, #tpu.memory_space<vmem>>) attributes {dimension_semantics = [#tpu.dimension_semantics<parallel>], iteration_bounds = array<i64: 2>, scalar_prefetch = 0 : i64, scratch_operands = 0 : i64, tpu.core_type = #tpu.core_type<tc>, window_params = [{transform_indices = @transform_0, window_bounds = array<i64: 1, 4, 400, 49>}, {pipeline_mode = #tpu.pipeline_mode<synchronous>, transform_indices = @transform_1, window_bounds = array<i64: 32, 400>}, {pipeline_mode = #tpu.pipeline_mode<synchronous>, transform_indices = @transform_2, window_bounds = array<i64: 32, 1>}, {transform_indices = @transform_3, window_bounds = array<i64: 1, 32, 49>}]} {
    %c0 = arith.constant 0 : index
    %c0_0 = arith.constant 0 : index
    %0 = vector.load %arg2[%c0, %c0_0] : memref<32x400xbf16, #tpu.memory_space<vmem>>, vector<32x400xbf16>
    %c0_1 = arith.constant 0 : index
    %c0_2 = arith.constant 0 : index
    %c0_3 = arith.constant 0 : index
    %c0_4 = arith.constant 0 : index
    %1 = vector.load %arg1[%c0_1, %c0_2, %c0_3, %c0_4] : memref<1x4x400x49xbf16, #tpu.memory_space<vmem>>, vector<1x1x400x49xbf16>
    %2 = vector.shape_cast %1 : vector<1x1x400x49xbf16> to vector<400x49xbf16>
    %cst = arith.constant dense<0.000000e+00> : vector<32x49xf32>
    %3 = tpu.matmul %0, %2, %cst {dimension_numbers = #tpu.dot_dimension_numbers<[1], [0], [0], [1], [0, 0, 1, 1], [], []>} : vector<32x400xbf16>, vector<400x49xbf16>, vector<32x49xf32> -> vector<32x49xf32>
    %c0_5 = arith.constant 0 : index
    %c1 = arith.constant 1 : index
    %c0_6 = arith.constant 0 : index
    %c0_7 = arith.constant 0 : index
    %4 = vector.load %arg1[%c0_5, %c1, %c0_6, %c0_7] : memref<1x4x400x49xbf16, #tpu.memory_space<vmem>>, vector<1x1x400x49xbf16>
    %5 = vector.shape_cast %4 : vector<1x1x400x49xbf16> to vector<400x49xbf16>
    %cst_8 = arith.constant dense<0.000000e+00> : vector<32x49xf32>
    %6 = tpu.matmul %0, %5, %cst_8 {dimension_numbers = #tpu.dot_dimension_numbers<[1], [0], [0], [1], [0, 0, 1, 1], [], []>} : vector<32x400xbf16>, vector<400x49xbf16>, vector<32x49xf32> -> vector<32x49xf32>
    %c0_9 = arith.constant 0 : index
    %c2 = arith.constant 2 : index
    %c0_10 = arith.constant 0 : index
    %c0_11 = arith.constant 0 : index
    %7 = vector.load %arg1[%c0_9, %c2, %c0_10, %c0_11] : memref<1x4x400x49xbf16, #tpu.memory_space<vmem>>, vector<1x1x400x49xbf16>
    %8 = vector.shape_cast %7 : vector<1x1x400x49xbf16> to vector<400x49xbf16>
    %cst_12 = arith.constant dense<0.000000e+00> : vector<32x49xf32>
    %9 = tpu.matmul %0, %8, %cst_12 {dimension_numbers = #tpu.dot_dimension_numbers<[1], [0], [0], [1], [0, 0, 1, 1], [], []>} : vector<32x400xbf16>, vector<400x49xbf16>, vector<32x49xf32> -> vector<32x49xf32>
    %c0_13 = arith.constant 0 : index
    %c3 = arith.constant 3 : index
    %c0_14 = arith.constant 0 : index
    %c0_15 = arith.constant 0 : index
    %10 = vector.load %arg1[%c0_13, %c3, %c0_14, %c0_15] : memref<1x4x400x49xbf16, #tpu.memory_space<vmem>>, vector<1x1x400x49xbf16>
    %11 = vector.shape_cast %10 : vector<1x1x400x49xbf16> to vector<400x49xbf16>
    %cst_16 = arith.constant dense<0.000000e+00> : vector<32x49xf32>
    %12 = tpu.matmul %0, %11, %cst_16 {dimension_numbers = #tpu.dot_dimension_numbers<[1], [0], [0], [1], [0, 0, 1, 1], [], []>} : vector<32x400xbf16>, vector<400x49xbf16>, vector<32x49xf32> -> vector<32x49xf32>
    %13 = arith.maximumf %3, %6 : vector<32x49xf32>
    %14 = arith.maximumf %9, %12 : vector<32x49xf32>
    %15 = arith.maximumf %13, %14 : vector<32x49xf32>
    %c0_17 = arith.constant 0 : index
    %c0_18 = arith.constant 0 : index
    %16 = vector.load %arg3[%c0_17, %c0_18] : memref<32x1xf32, #tpu.memory_space<vmem>>, vector<32x1xf32>
    %17 = vector.broadcast %16 : vector<32x1xf32> to vector<32x49xf32>
    %18 = arith.addf %15, %17 : vector<32x49xf32>
    %cst_19 = arith.constant 0.000000e+00 : f32
    %19 = vector.broadcast %cst_19 : f32 to vector<32x49xf32>
    %20 = arith.maximumf %18, %19 : vector<32x49xf32>
    %21 = arith.truncf %20 : vector<32x49xf32> to vector<32x49xbf16>
    %c0_20 = arith.constant 0 : index
    %c0_21 = arith.constant 0 : index
    %c0_22 = arith.constant 0 : index
    %22 = vector.load %arg4[%c0_20, %c0_21, %c0_22] : memref<1x32x49xbf16, #tpu.memory_space<vmem>>, vector<1x32x49xbf16>
    %23 = vector.shape_cast %22 : vector<1x32x49xbf16> to vector<32x49xbf16>
    %24 = vector.shape_cast %21 : vector<32x49xbf16> to vector<1x32x49xbf16>
    tpu.vector_store %arg4[%c0_20, %c0_21, %c0_22], %24 {strides = array<i32>} : memref<1x32x49xbf16, #tpu.memory_space<vmem>>, vector<1x32x49xbf16>,
    return
  }
  func.func @transform_0(%arg0: i32) -> (i32, i32, i32, i32) {
    %c0_i32 = arith.constant 0 : i32
    %c0_i32_0 = arith.constant 0 : i32
    %c0_i32_1 = arith.constant 0 : i32
    %c0_i32_2 = arith.constant 0 : i32
    return %arg0, %c0_i32, %c0_i32_0, %c0_i32_1 : i32, i32, i32, i32
  }
  func.func @transform_1(%arg0: i32) -> (i32, i32) {
    %c0_i32 = arith.constant 0 : i32
    %c0_i32_0 = arith.constant 0 : i32
    %c0_i32_1 = arith.constant 0 : i32
    return %c0_i32, %c0_i32_0 : i32, i32
  }
  func.func @transform_2(%arg0: i32) -> (i32, i32) {
    %c0_i32 = arith.constant 0 : i32
    %c0_i32_0 = arith.constant 0 : i32
    %c0_i32_1 = arith.constant 0 : i32
    return %c0_i32, %c0_i32_0 : i32, i32
  }
  func.func @transform_3(%arg0: i32) -> (i32, i32, i32) {
    %c0_i32 = arith.constant 0 : i32
    %c0_i32_0 = arith.constant 0 : i32
    %c0_i32_1 = arith.constant 0 : i32
    return %arg0, %c0_i32, %c0_i32_0 : i32, i32, i32
  }
}

module attributes {stable_mosaic.version = 11 : i64} {
  func.func @_fc_fused_kernel(%arg0: i32, %arg1: memref<2x1568xbf16, #tpu.memory_space<vmem>>, %arg2: memref<1568x128xbf16, #tpu.memory_space<vmem>>, %arg3: memref<1x128xf32, #tpu.memory_space<vmem>>, %arg4: memref<128x10xbf16, #tpu.memory_space<vmem>>, %arg5: memref<1x10xf32, #tpu.memory_space<vmem>>, %arg6: memref<2x10xf32, #tpu.memory_space<vmem>>, %arg7: memref<2x128xf32, #tpu.memory_space<vmem>>) attributes {dimension_semantics = [#tpu.dimension_semantics<parallel>], iteration_bounds = array<i64: 1>, scalar_prefetch = 0 : i64, scratch_operands = 0 : i64, tpu.core_type = #tpu.core_type<tc>, window_params = [{transform_indices = @transform_0, window_bounds = array<i64: 2, 1568>}, {pipeline_mode = #tpu.pipeline_mode<synchronous>, transform_indices = @transform_1, window_bounds = array<i64: 1568, 128>}, {pipeline_mode = #tpu.pipeline_mode<synchronous>, transform_indices = @transform_2, window_bounds = array<i64: 1, 128>}, {pipeline_mode = #tpu.pipeline_mode<synchronous>, transform_indices = @transform_3, window_bounds = array<i64: 128, 10>}, {pipeline_mode = #tpu.pipeline_mode<synchronous>, transform_indices = @transform_4, window_bounds = array<i64: 1, 10>}, {transform_indices = @transform_5, window_bounds = array<i64: 2, 10>}, {transform_indices = @transform_6, window_bounds = array<i64: 2, 128>}]} {
    %c0 = arith.constant 0 : index
    %c0_0 = arith.constant 0 : index
    %0 = vector.load %arg1[%c0, %c0_0] : memref<2x1568xbf16, #tpu.memory_space<vmem>>, vector<2x1568xbf16>
    %c0_1 = arith.constant 0 : index
    %c0_2 = arith.constant 0 : index
    %1 = vector.load %arg2[%c0_1, %c0_2] : memref<1568x128xbf16, #tpu.memory_space<vmem>>, vector<1568x128xbf16>
    %cst = arith.constant dense<0.000000e+00> : vector<2x128xf32>
    %2 = tpu.matmul %0, %1, %cst {dimension_numbers = #tpu.dot_dimension_numbers<[1], [0], [0], [1], [0, 0, 1, 1], [], []>} : vector<2x1568xbf16>, vector<1568x128xbf16>, vector<2x128xf32> -> vector<2x128xf32>
    %c0_3 = arith.constant 0 : index
    %c0_4 = arith.constant 0 : index
    %3 = vector.load %arg3[%c0_3, %c0_4] : memref<1x128xf32, #tpu.memory_space<vmem>>, vector<1x128xf32>
    %4 = vector.broadcast %3 : vector<1x128xf32> to vector<2x128xf32>
    %5 = arith.addf %2, %4 : vector<2x128xf32>
    %cst_5 = arith.constant 0.000000e+00 : f32
    %6 = vector.broadcast %cst_5 : f32 to vector<2x128xf32>
    %7 = arith.maximumf %5, %6 : vector<2x128xf32>
    %c0_6 = arith.constant 0 : index
    %c0_7 = arith.constant 0 : index
    %8 = vector.load %arg7[%c0_6, %c0_7] : memref<2x128xf32, #tpu.memory_space<vmem>>, vector<2x128xf32>
    tpu.vector_store %arg7[%c0_6, %c0_7], %7 {strides = array<i32>} : memref<2x128xf32, #tpu.memory_space<vmem>>, vector<2x128xf32>,
    %9 = arith.truncf %7 : vector<2x128xf32> to vector<2x128xbf16>
    %c0_8 = arith.constant 0 : index
    %c0_9 = arith.constant 0 : index
    %10 = vector.load %arg4[%c0_8, %c0_9] : memref<128x10xbf16, #tpu.memory_space<vmem>>, vector<128x10xbf16>
    %cst_10 = arith.constant dense<0.000000e+00> : vector<2x10xf32>
    %11 = tpu.matmul %9, %10, %cst_10 {dimension_numbers = #tpu.dot_dimension_numbers<[1], [0], [0], [1], [0, 0, 1, 1], [], []>} : vector<2x128xbf16>, vector<128x10xbf16>, vector<2x10xf32> -> vector<2x10xf32>
    %c0_11 = arith.constant 0 : index
    %c0_12 = arith.constant 0 : index
    %12 = vector.load %arg5[%c0_11, %c0_12] : memref<1x10xf32, #tpu.memory_space<vmem>>, vector<1x10xf32>
    %13 = vector.broadcast %12 : vector<1x10xf32> to vector<2x10xf32>
    %14 = arith.addf %11, %13 : vector<2x10xf32>
    %cst_13 = arith.constant dense<0xFF800000> : vector<2xf32>
    %15 = vector.multi_reduction <maximumf>, %14, %cst_13 [1] : vector<2x10xf32> to vector<2xf32>
    %16 = vector.shape_cast %15 : vector<2xf32> to vector<2x1xf32>
    %17 = vector.broadcast %16 : vector<2x1xf32> to vector<2x10xf32>
    %18 = arith.subf %14, %17 : vector<2x10xf32>
    %19 = math.exp %18 : vector<2x10xf32>
    %cst_14 = arith.constant dense<0.000000e+00> : vector<2xf32>
    %20 = vector.multi_reduction <add>, %19, %cst_14 [1] : vector<2x10xf32> to vector<2xf32>
    %21 = vector.shape_cast %20 : vector<2xf32> to vector<2x1xf32>
    %22 = math.log %21 : vector<2x1xf32>
    %23 = vector.broadcast %22 : vector<2x1xf32> to vector<2x10xf32>
    %24 = arith.subf %18, %23 : vector<2x10xf32>
    %c0_15 = arith.constant 0 : index
    %c0_16 = arith.constant 0 : index
    %25 = vector.load %arg6[%c0_15, %c0_16] : memref<2x10xf32, #tpu.memory_space<vmem>>, vector<2x10xf32>
    tpu.vector_store %arg6[%c0_15, %c0_16], %24 {strides = array<i32>} : memref<2x10xf32, #tpu.memory_space<vmem>>, vector<2x10xf32>,
    return
  }
  func.func @transform_0(%arg0: i32) -> (i32, i32) {
    %c0_i32 = arith.constant 0 : i32
    %c0_i32_0 = arith.constant 0 : i32
    return %arg0, %c0_i32 : i32, i32
  }
  func.func @transform_1(%arg0: i32) -> (i32, i32) {
    %c0_i32 = arith.constant 0 : i32
    %c0_i32_0 = arith.constant 0 : i32
    %c0_i32_1 = arith.constant 0 : i32
    return %c0_i32, %c0_i32_0 : i32, i32
  }
  func.func @transform_2(%arg0: i32) -> (i32, i32) {
    %c0_i32 = arith.constant 0 : i32
    %c0_i32_0 = arith.constant 0 : i32
    %c0_i32_1 = arith.constant 0 : i32
    return %c0_i32, %c0_i32_0 : i32, i32
  }
  func.func @transform_3(%arg0: i32) -> (i32, i32) {
    %c0_i32 = arith.constant 0 : i32
    %c0_i32_0 = arith.constant 0 : i32
    %c0_i32_1 = arith.constant 0 : i32
    return %c0_i32, %c0_i32_0 : i32, i32
  }
  func.func @transform_4(%arg0: i32) -> (i32, i32) {
    %c0_i32 = arith.constant 0 : i32
    %c0_i32_0 = arith.constant 0 : i32
    %c0_i32_1 = arith.constant 0 : i32
    return %c0_i32, %c0_i32_0 : i32, i32
  }
  func.func @transform_5(%arg0: i32) -> (i32, i32) {
    %c0_i32 = arith.constant 0 : i32
    %c0_i32_0 = arith.constant 0 : i32
    return %arg0, %c0_i32 : i32, i32
  }
  func.func @transform_6(%arg0: i32) -> (i32, i32) {
    %c0_i32 = arith.constant 0 : i32
    %c0_i32_0 = arith.constant 0 : i32
    return %arg0, %c0_i32 : i32, i32
  }
}

</mosaic_0001>

<bundles_post_ra>
// kernel: cnn_forward.3
= control target key start
LH: loop header
LB: loop body
LE: loop exit
PB: predicated region body
PF: predicated region fallthrough
CT: control target
= control target key end

     0   :  { %s693_s12 = smov 0   ;;  %s747_s0 = inlined_call_operand.vmem [shape: bf16[2,4,25,196], index: 0, kind: input, shape index: {}]   ;;  %s748_s1 = inlined_call_operand.vmem [shape: bf16[16,25], index: 1, kind: input, shape index: {}]   ;;  %s749_s2 = inlined_call_operand.vmem [shape: f32[16,1], index: 2, kind: input, shape index: {}]   ;;  %s750_s3 = inlined_call_operand.vmem [shape: bf16[2,16,196], index: 3, kind: output, shape index: {}]  }
   0x1 LB: > { %s577_s13 = sadd.s32 4294967295, %s669_s12   ;;  %p581_p0 = scmp.ge.s32.totalorder %s669_s12, 1  ;;  %s669_s12 = sphi %s693_s12, %s13_s12  }
   0x2   : > { %p137_p1 = scmp.lt.s32.totalorder %s669_s12, 3 }
   0x4   : > { %p138_p2 = pnand %p581_p0, %p137_p1 }
   0x5   : > { %p161_p3 = scmp.lt.s32.totalorder (!%p138_p2), %s577_s13, 1  ;;  %v671_v0 = vmov (!%p138_p2), 0   ;;  %vm205_vm0 = vcmask (!%p138_p2), 1043456   ;;  %v486_v1 = vld [vmem:[%s749_s2] sm:$0xff] (!%p138_p2)  ;;  %v487_v2 = vld [vmem:[%s749_s2 + $0x8] sm:$0xff] (!%p138_p2)  ;;  %vm206_vm1 = vcmask (!%p138_p2), 1044480  }
   0x6   : > { %141 = sbr.rel (%p138_p2) target bundleno = 260 (0x104), region = 32  ;;  %247 = vmatprep.mubr.bf16.mxu0 (!%p138_p2), %v671_v0  ;;  %319 = vmatprep.mubr.bf16.mxu1 (!%p138_p2), %v671_v0  ;;  %v672_v3 = vmov (!%p138_p2), 65535   ;;  %v650_v16 = vld [vmem:[%s748_s1] sm:$0xff] (!%p138_p2)   ;;  %vm201_vm2 = vcmask (!%p138_p2), 203776   ;;  %vm518_vm3 = vcmask (!%p138_p2), 556036  }
   0x7   : > { %637 = vset.pattern.permute.xlu0 (!%p138_p2), %v671_v0  ;;  %v207_v4 = vsel (!%p138_p2), %vm205_vm0, 4294967295, %v672_v3  ;;  %vm519_vm4 = vmor (!%p138_p2), %vm518_vm3, %vm205_vm0 }
   0x8   : > { %490 = vperm.xlu0 (!%p138_p2), %637, %v486_v1   ;;  %v208_v9 = vsel (!%p138_p2), %vm206_vm1, %v207_v4, 0 }
   0xc   : > { %495 = vperm.xlu0 (!%p138_p2), %637, %v487_v2  }
   0xd   : > { %s752_s13 = smov (!%p161_p3, %s577_s13), 1 }
   0xe   : > { %s623_s16 = sshll.u32 %s752_s13, 7  ;;  %s624_s24 = sshll.u32 %s752_s13, 4 }
   0xf   : > { %s713_s21 = scalar_lea.vmem %s747_s0, %s623_s16  ;;  %s170_s27 = scalar_lea.vmem %s750_s3, %s624_s24 }
  0x10   : > { %v638_v5 = vld [vmem:[%s713_s21 + $0x4] ss:$8 sps:$4 sm:$0xff]   ;;  %v642_v7 = vld [vmem:[%s713_s21] ss:$8 sps:$4 sm:$0xff]  }
  0x11   : > { %v640_v6 = vld [vmem:[%s713_s21 + $0x24] ss:$8 sps:$4 sm:$0xff]   ;;  %215 = vmatprep.subr.bf16.mxu0 %v638_v5  ;;  %v643_v8 = vld [vmem:[%s713_s21 + $0x20] ss:$8 sps:$4 sm:$0xff]  }
  0x12   : > { %287 = vmatprep.subr.bf16.mxu1 %v640_v6  ;;  %v644_v10 = vld [vmem:[%s713_s21 + $0x14] ss:$8 sps:$4 sm:$0x1f]   ;;  %216 = vmatpush1.bf16.msra.mxu0 %v642_v7  ;;  %v648_v13 = vld [vmem:[%s713_s21 + $0x10] ss:$8 sps:$4 sm:$0x1f]  }
  0x13   : > { %288 = vmatpush1.bf16.msra.mxu1 %v643_v8  ;;  %v646_v11 = vld [vmem:[%s713_s21 + $0x34] ss:$8 sps:$4 sm:$0x1f]   ;;  %v213_v12 = vand.u32 %v644_v10, %v208_v9  ;;  %v649_v14 = vld [vmem:[%s713_s21 + $0x30] ss:$8 sps:$4 sm:$0x1f]   ;;  %v210_v18 = vand.u32 %v648_v13, %v208_v9 }
  0x14   : > { %v285_v15 = vand.u32 %v646_v11, %v208_v9  ;;  %v653_v17 = vld [vmem:[%s713_s21 + $0x44] ss:$8 sps:$4 sm:$0xff]   ;;  %v282_v19 = vand.u32 %v649_v14, %v208_v9  ;;  %v651_v20 = vld [vmem:[%s713_s21 + $0x40] ss:$8 sps:$4 sm:$0xff]  }
  0x15   : > { %217 = vmatprep.subr.bf16.mxu0 %v213_v12  ;;  %v654_v21 = vld [vmem:[%s713_s21 + $0x60] ss:$8 sps:$4 sm:$0xff]   ;;  %v656_v22 = vld [vmem:[%s713_s21 + $0x64] ss:$8 sps:$4 sm:$0xff]  }
  0x16   : > { %289 = vmatprep.subr.bf16.mxu1 %v285_v15  ;;  %218 = vmatpush1.bf16.msra.mxu0 %v210_v18  ;;  %v657_v23 = vld [vmem:[%s713_s21 + $0x50] ss:$8 sps:$4 sm:$0x1f]   ;;  %v659_v24 = vld [vmem:[%s713_s21 + $0x54] ss:$8 sps:$4 sm:$0x1f]  }
  0x17   : > { %290 = vmatpush1.bf16.msra.mxu1 %v282_v19  ;;  %359 = vmatprep.subr.bf16.mxu0 %v653_v17  ;;  %v660_v25 = vld [vmem:[%s713_s21 + $0x70] ss:$8 sps:$4 sm:$0x1f]   ;;  %v357_v26 = vand.u32 %v659_v24, %v208_v9  ;;  %v662_v27 = vld [vmem:[%s713_s21 + $0x74] ss:$8 sps:$4 sm:$0x1f]   ;;  %v354_v29 = vand.u32 %v657_v23, %v208_v9 }
  0x18   : > { %431 = vmatprep.subr.bf16.mxu1 %v656_v22  ;;  %v429_v28 = vand.u32 %v662_v27, %v208_v9  ;;  %v426_v30 = vand.u32 %v660_v25, %v208_v9 }
  0x19   : > { %591 = vmatmul.mubr.msk.bf16.vlgmr.msra.gmra.mrb[0].mxu0 %vm201_vm2, %v650_v16 }
  0x1a   : > { %600 = vmatmul.mubr.msk.bf16.vlgmr.msra.gmra.mrb[0].mxu1 %vm201_vm2, %v650_v16  ;;  %360 = vmatpush1.bf16.msra.mxu0 %v651_v20 }
  0x1b   : > { %432 = vmatpush1.bf16.msra.mxu1 %v654_v21  ;;  %361 = vmatprep.subr.bf16.mxu0 %v357_v26 }
  0x1c   : > { %391 = vmatprep.mubr.bf16.mxu0 %v671_v0  ;;  %433 = vmatprep.subr.bf16.mxu1 %v429_v28 }
  0x1d   : > { %463 = vmatprep.mubr.bf16.mxu1 %v671_v0 }
  0x1e   : > { %362 = vmatpush1.bf16.msra.mxu0 %v354_v29 }
  0x1f   : > { %434 = vmatpush1.bf16.msra.mxu1 %v426_v30 }
  0x21   : > { %609 = vmatmul.mubr.msk.bf16.vlgmr.msra.gmra.mrb[4].mxu0 %vm201_vm2, %v650_v16 }
  0x22   : > { %618 = vmatmul.mubr.msk.bf16.vlgmr.msra.gmra.mrb[4].mxu1 %vm201_vm2, %v650_v16 }
  0x87   : > { %v491_v43 = vpop.permute.xlu0 %490 }
  0x8b   : > { %v496_v61 = vpop.permute.xlu0 %495 }
  0xec   : > { %v249_v31 = vpop.f32.mrb[0].mxu0 }
  0xed   : > { %v321_v32 = vpop.f32.mrb[0].mxu1  ;;  %v251_v34 = vpop.f32.mrb[1].mxu0 }
  0xee   : > { %v474_v33 = vmax.f32 %v249_v31, %v321_v32  ;;  %v323_v35 = vpop.f32.mrb[1].mxu1  ;;  %v253_v37 = vpop.f32.mrb[2].mxu0 }
  0xef   : > { %v475_v36 = vmax.f32 %v251_v34, %v323_v35  ;;  %v325_v38 = vpop.f32.mrb[2].mxu1  ;;  %v255_v40 = vpop.f32.mrb[3].mxu0 }
  0xf0   : > { %v476_v39 = vmax.f32 %v253_v37, %v325_v38  ;;  %v327_v41 = vpop.f32.mrb[3].mxu1 }
  0xf1   : > { %v477_v42 = vmax.f32 %v255_v40, %v327_v41 }
  0xf4   : > { %v393_v44 = vpop.f32.mrb[4].mxu0 }
  0xf5   : > { %v465_v45 = vpop.f32.mrb[4].mxu1  ;;  %v395_v47 = vpop.f32.mrb[5].mxu0 }
  0xf6   : > { %v478_v46 = vmax.f32 %v393_v44, %v465_v45  ;;  %v467_v48 = vpop.f32.mrb[5].mxu1  ;;  %v397_v50 = vpop.f32.mrb[6].mxu0 }
  0xf7   : > { %v479_v49 = vmax.f32 %v395_v47, %v467_v48  ;;  %v469_v51 = vpop.f32.mrb[6].mxu1  ;;  %v399_v54 = vpop.f32.mrb[7].mxu0 }
  0xf8   : > { %v482_v52 = vmax.f32 %v474_v33, %v478_v46  ;;  %v480_v53 = vmax.f32 %v397_v50, %v469_v51  ;;  %v471_v55 = vpop.f32.mrb[7].mxu1 }
  0xf9   : > { %v483_v56 = vmax.f32 %v475_v36, %v479_v49  ;;  %v481_v57 = vmax.f32 %v399_v54, %v471_v55 }
  0xfa   : > { %v498_v58 = vadd.f32 %v491_v43, %v482_v52  ;;  %v484_v59 = vmax.f32 %v476_v39, %v480_v53 }
  0xfb   : > { %v499_v60 = vadd.f32 %v491_v43, %v483_v56  ;;  %v485_v62 = vmax.f32 %v477_v42, %v481_v57 }
  0xfc   : > { %v502_v63 = vmax.f32 %v498_v58, 0.0  ;;  %v500_v0 = vadd.f32 %v496_v61, %v484_v59 }
  0xfd   : > { %v503_v1 = vmax.f32 %v499_v60, 0.0  ;;  %v501_v2 = vadd.f32 %v496_v61, %v485_v62 }
  0xfe   : > { %v504_v3 = vmax.f32 %v500_v0, 0.0 }
  0xff   : > { %v625_v4 = vpack.c.bf16 %v503_v1, %v502_v63  ;;  %v505_v5 = vmax.f32 %v501_v2, 0.0 }
 0x101   : > { %v626_v6 = vpack.c.bf16 %v505_v5, %v504_v3  ;;  %520 = vst.msk [vmem:[%s170_s27] sm:$0xff] %vm519_vm4, %v625_v4 }
 0x103   : > { %521 = vst.msk [vmem:[%s170_s27 + $0x8] sm:$0xff] %vm519_vm4, %v626_v6 }
 0x104 PF: > { %s13_s12 = sadd.s32 1, %s669_s12  }
 0x105   : > { %p10_p4 = scmp.ge.s32.totalorder %s13_s12, 4  }
 0x107   :  { %12 = sbr.rel (!%p10_p4) target bundleno = 1 (0x1), region = 65 }

// kernel: cnn_forward.4
= control target key start
LH: loop header
LB: loop body
LE: loop exit
PB: predicated region body
PF: predicated region fallthrough
CT: control target
= control target key end

     0   :  { %s2090_s12 = smov 0   ;;  %s2377_s0 = inlined_call_operand.vmem [shape: bf16[2,4,400,49], index: 0, kind: input, shape index: {}]   ;;  %s2378_s1 = inlined_call_operand.vmem [shape: bf16[32,400], index: 1, kind: input, shape index: {}]   ;;  %s2379_s2 = inlined_call_operand.vmem [shape: f32[32,1], index: 2, kind: input, shape index: {}]   ;;  %s2380_s3 = inlined_call_operand.vmem [shape: bf16[2,32,49], index: 3, kind: output, shape index: {}]  }
   0x1 LB: > { %s1540_s13 = sadd.s32 4294967295, %s2067_s12   ;;  %p1544_p0 = scmp.ge.s32.totalorder %s2067_s12, 1  ;;  %s2067_s12 = sphi %s2090_s12, %s13_s12  }
   0x2   : > { %p137_p1 = scmp.lt.s32.totalorder %s2067_s12, 3 }
   0x4   : > { %p138_p2 = pnand %p1544_p0, %p137_p1 }
   0x5   : > { %p161_p3 = scmp.lt.s32.totalorder (!%p138_p2), %s1540_s13, 1  ;;  %v2101_v0 = vld [vmem:[%s2378_s1 + $0x4] ss:$16 sps:$4 sm:$0xff] (!%p138_p2)   ;;  %v2069_v1 = vmov (!%p138_p2), 0   ;;  %vm418_vm0 = vcmask (!%p138_p2), 130048   ;;  %vm1480_vm1 = vcmask (!%p138_p2), 396288  }
   0x6   : > { %141 = sbr.rel (%p138_p2) target bundleno = 397 (0x18d), region = 32  ;;  %474 = vmatprep.subr.bf16.mxu1 (!%p138_p2), %v2069_v1  ;;  %1947 = vset.pattern.permute.xlu0 (!%p138_p2), %v2069_v1  ;;  %v2111_v2 = vld [vmem:[%s2378_s1 + $0xc] ss:$16 sps:$4 sm:$0xff] (!%p138_p2)   ;;  %v2157_v28 = vld [vmem:[%s2378_s1] ss:$16 sps:$4 sm:$0xff] (!%p138_p2)  }
   0x7   : > { %457 = vmatprep.mubr.bf16.mxu0 (!%p138_p2), %v2101_v0  ;;  %1948 = vset.pattern.permute.xlu1 (!%p138_p2), %v2069_v1  ;;  %v2163_v30 = vld [vmem:[%s2378_s1 + $0x24] ss:$16 sps:$4 sm:$0xff] (!%p138_p2)   ;;  %v2169_v31 = vld [vmem:[%s2378_s1 + $0x8] ss:$16 sps:$4 sm:$0xff] (!%p138_p2)   ;;  %v2176_v34 = vld [vmem:[%s2378_s1 + $0x2c] ss:$16 sps:$4 sm:$0xff] (!%p138_p2)  }
   0x8   : > { %1581 = vmatprep.mubr.msk.bf16.mxu1 (!%p138_p2), %vm418_vm0, %v2111_v2  ;;  %v2188_v38 = vld [vmem:[%s2378_s1 + $0x20] ss:$16 sps:$4 sm:$0xff] (!%p138_p2)   ;;  %v2199_v42 = vld [vmem:[%s2378_s1 + $0x28] ss:$16 sps:$4 sm:$0xff] (!%p138_p2)  }
   0xd   : > { %s2382_s13 = smov (!%p161_p3, %s1540_s13), 1 }
   0xe   : > { %s1937_s18 = smul.u32 800, %s2382_s13  ;;  %s1820_s17 = sshll.u32 %s2382_s13, 4 }
   0xf   : > { %s170_s20 = scalar_lea.vmem %s2380_s3, %s1820_s17 }
  0x10   : > { %s2120_s21 = scalar_lea.vmem %s2377_s0, %s1937_s18 }
  0x11   : > { %v1949_v3 = vld [vmem:[%s2120_s21 + $0x40] sm:$0xff]   ;;  %v1952_v6 = vld [vmem:[%s2120_s21 + $0x48] sm:$0xff]   ;;  %v1955_v9 = vld [vmem:[%s2120_s21 + $0x50] sm:$0xff]  }
  0x12   : > { %v1950_v4 = vld [vmem:[%s2120_s21 + $0x80] sm:$0xff]   ;;  %1825 = vmatprep.subr.bf16.mxu0 %v1949_v3  ;;  %v1953_v7 = vld [vmem:[%s2120_s21 + $0x88] sm:$0xff]   ;;  %v1956_v10 = vld [vmem:[%s2120_s21 + $0x90] sm:$0xff]  }
  0x13   : > { %v1951_v5 = vld [vmem:[%s2120_s21] sm:$0xff]   ;;  %475 = vmatpush1.bf16.msra.mxu1 %v1950_v4  ;;  %v1954_v8 = vld [vmem:[%s2120_s21 + $0x8] sm:$0xff]   ;;  %v1957_v11 = vld [vmem:[%s2120_s21 + $0x10] sm:$0xff]  }
  0x14   : > { %1826 = vmatpush3.bf16.msra.mxu0 %v1951_v5  ;;  %476 = vmatprep.subr.bf16.mxu1 %v2069_v1  ;;  %v1958_v12 = vld [vmem:[%s2120_s21 + $0x58] sm:$0xff]   ;;  %v1961_v15 = vld [vmem:[%s2120_s21 + $0x60] sm:$0xff]   ;;  %v1964_v18 = vld [vmem:[%s2120_s21 + $0x68] sm:$0xff]  }
  0x15   : > { %1827 = vmatprep.subr.bf16.mxu0 %v1952_v6  ;;  %v1959_v13 = vld [vmem:[%s2120_s21 + $0x98] sm:$0xff]   ;;  %v1962_v16 = vld [vmem:[%s2120_s21 + $0xa0] sm:$0xff]   ;;  %v1965_v19 = vld [vmem:[%s2120_s21 + $0xa8] sm:$0xff]  }
  0x16   : > { %v1960_v14 = vld [vmem:[%s2120_s21 + $0x18] sm:$0xff]   ;;  %v1963_v17 = vld [vmem:[%s2120_s21 + $0x20] sm:$0xff]   ;;  %v1966_v20 = vld [vmem:[%s2120_s21 + $0x28] sm:$0xff]  }
  0x17   : > { %477 = vmatpush1.bf16.msra.mxu1 %v1953_v7  ;;  %v1967_v21 = vld [vmem:[%s2120_s21 + $0x70] sm:$0xff]   ;;  %v1970_v24 = vld [vmem:[%s2120_s21 + $0x78] sm:$0xff]   ;;  %v1980_v27 = vld [vmem:[%s2120_s21 + $0x108] sm:$0xff]  }
  0x18   : > { %1828 = vmatpush3.bf16.msra.mxu0 %v1954_v8  ;;  %478 = vmatprep.subr.bf16.mxu1 %v2069_v1  ;;  %v1968_v22 = vld [vmem:[%s2120_s21 + $0xb0] sm:$0xff]   ;;  %v1971_v25 = vld [vmem:[%s2120_s21 + $0xb8] sm:$0xff]   ;;  %v1976_v29 = vld [vmem:[%s2120_s21 + $0xc0] sm:$0xff]  }
  0x19   : > { %1829 = vmatprep.subr.bf16.mxu0 %v1955_v9  ;;  %v1969_v23 = vld [vmem:[%s2120_s21 + $0x30] sm:$0xff]   ;;  %v1972_v26 = vld [vmem:[%s2120_s21 + $0x38] sm:$0xff]   ;;  %v1982_v32 = vld [vmem:[%s2120_s21 + $0xc8] sm:$0xff]  }
  0x1a   : > { %v1983_v33 = vld [vmem:[%s2120_s21 + $0x110] sm:$0xff]   ;;  %v1981_v35 = vld [vmem:[%s2120_s21 + $0x148] sm:$0xff]   ;;  %v1986_v37 = vld [vmem:[%s2120_s21 + $0x118] sm:$0xff]  }
  0x1b   : > { %479 = vmatpush1.bf16.msra.mxu1 %v1956_v10  ;;  %v1985_v36 = vld [vmem:[%s2120_s21 + $0xd0] sm:$0xff]   ;;  %v1988_v40 = vld [vmem:[%s2120_s21 + $0xd8] sm:$0xff]   ;;  %v1989_v41 = vld [vmem:[%s2120_s21 + $0x120] sm:$0xff]  }
  0x1c   : > { %1830 = vmatpush3.bf16.msra.mxu0 %v1957_v11  ;;  %480 = vmatprep.subr.bf16.mxu1 %v2069_v1  ;;  %v1984_v39 = vld [vmem:[%s2120_s21 + $0x150] sm:$0xff]   ;;  %v1987_v43 = vld [vmem:[%s2120_s21 + $0x158] sm:$0xff]   ;;  %v1991_v44 = vld [vmem:[%s2120_s21 + $0xe0] sm:$0xff]  }
  0x1d   : > { %1831 = vmatprep.subr.bf16.mxu0 %v1958_v12  ;;  %v1992_v45 = vld [vmem:[%s2120_s21 + $0x128] sm:$0xff]   ;;  %v1990_v46 = vld [vmem:[%s2120_s21 + $0x160] sm:$0xff]   ;;  %v1995_v48 = vld [vmem:[%s2120_s21 + $0x130] sm:$0xff]  }
  0x1e   : > { %v1994_v47 = vld [vmem:[%s2120_s21 + $0xe8] sm:$0xff]   ;;  %v1997_v50 = vld [vmem:[%s2120_s21 + $0xf0] sm:$0xff]   ;;  %v2003_v51 = vld [vmem:[%s2120_s21 + $0x138] sm:$0xff]  }
  0x1f   : > { %481 = vmatpush1.bf16.msra.mxu1 %v1959_v13  ;;  %v1993_v49 = vld [vmem:[%s2120_s21 + $0x168] sm:$0xff]   ;;  %v1996_v52 = vld [vmem:[%s2120_s21 + $0x170] sm:$0xff]   ;;  %v2006_v53 = vld [vmem:[%s2120_s21 + $0xf8] sm:$0xff]  }
  0x20   : > { %1832 = vmatpush3.bf16.msra.mxu0 %v1960_v14  ;;  %482 = vmatprep.subr.bf16.mxu1 %v2069_v1  ;;  %v2007_v54 = vld [vmem:[%s2120_s21 + $0x140] sm:$0xff]   ;;  %v2004_v55 = vld [vmem:[%s2120_s21 + $0x178] sm:$0xff]   ;;  %v2011_v57 = vld [vmem:[%s2120_s21 + $0x1d0] sm:$0xff]  }
  0x21   : > { %1833 = vmatprep.subr.bf16.mxu0 %v1961_v15  ;;  %v2009_v56 = vld [vmem:[%s2120_s21 + $0x100] sm:$0xff]   ;;  %v2013_v59 = vld [vmem:[%s2120_s21 + $0x190] sm:$0xff]   ;;  %v2014_v60 = vld [vmem:[%s2120_s21 + $0x1d8] sm:$0xff]  }
  0x22   : > { %v2008_v58 = vld [vmem:[%s2120_s21 + $0x180] sm:$0xff]   ;;  %v2010_v61 = vld [vmem:[%s2120_s21 + $0x188] sm:$0xff]   ;;  %v2016_v62 = vld [vmem:[%s2120_s21 + $0x198] sm:$0xff]  }
  0x23   : > { %483 = vmatpush1.bf16.msra.mxu1 %v1962_v16  ;;  %v2017_v63 = vld [vmem:[%s2120_s21 + $0x1e0] sm:$0xff]   ;;  %v2012_v3 = vld [vmem:[%s2120_s21 + $0x210] sm:$0xff]   ;;  %v2020_v5 = vld [vmem:[%s2120_s21 + $0x1e8] sm:$0xff]  }
  0x24   : > { %1834 = vmatpush3.bf16.msra.mxu0 %v1963_v17  ;;  %484 = vmatprep.subr.bf16.mxu1 %v2069_v1  ;;  %v2019_v4 = vld [vmem:[%s2120_s21 + $0x1a0] sm:$0xff]   ;;  %v2015_v6 = vld [vmem:[%s2120_s21 + $0x218] sm:$0xff]   ;;  %v2022_v7 = vld [vmem:[%s2120_s21 + $0x1a8] sm:$0xff]  }
  0x25   : > { %1835 = vmatprep.subr.bf16.mxu0 %v1964_v18  ;;  %v2023_v8 = vld [vmem:[%s2120_s21 + $0x1f0] sm:$0xff]   ;;  %v2018_v9 = vld [vmem:[%s2120_s21 + $0x220] sm:$0xff]   ;;  %v2026_v11 = vld [vmem:[%s2120_s21 + $0x1f8] sm:$0xff]  }
  0x26   : > { %v2025_v10 = vld [vmem:[%s2120_s21 + $0x1b0] sm:$0xff]   ;;  %v2021_v12 = vld [vmem:[%s2120_s21 + $0x228] sm:$0xff]   ;;  %v2028_v13 = vld [vmem:[%s2120_s21 + $0x1b8] sm:$0xff]  }
  0x27   : > { %485 = vmatpush1.bf16.msra.mxu1 %v1965_v19  ;;  %v2029_v14 = vld [vmem:[%s2120_s21 + $0x200] sm:$0xff]   ;;  %v2024_v15 = vld [vmem:[%s2120_s21 + $0x230] sm:$0xff]   ;;  %v2032_v17 = vld [vmem:[%s2120_s21 + $0x208] sm:$0xff]  }
  0x28   : > { %1836 = vmatpush3.bf16.msra.mxu0 %v1966_v20  ;;  %486 = vmatprep.subr.bf16.mxu1 %v2069_v1  ;;  %v2031_v16 = vld [vmem:[%s2120_s21 + $0x1c0] sm:$0xff]   ;;  %v2027_v18 = vld [vmem:[%s2120_s21 + $0x238] sm:$0xff]   ;;  %v2034_v19 = vld [vmem:[%s2120_s21 + $0x1c8] sm:$0xff]  }
  0x29   : > { %1837 = vmatprep.subr.bf16.mxu0 %v1967_v21  ;;  %v2036_v20 = vld [vmem:[%s2120_s21 + $0x298] sm:$0xff]   ;;  %v2030_v21 = vld [vmem:[%s2120_s21 + $0x240] sm:$0xff]  }
  0x2b   : > { %487 = vmatpush1.bf16.msra.mxu1 %v1968_v22  ;;  %v2037_v22 = vld [vmem:[%s2120_s21 + $0x258] sm:$0xff]  }
  0x2c   : > { %1838 = vmatpush3.bf16.msra.mxu0 %v1969_v23  ;;  %488 = vmatprep.subr.bf16.mxu1 %v2069_v1  ;;  %v2039_v23 = vld [vmem:[%s2120_s21 + $0x2a0] sm:$0xff]  }
  0x2d   : > { %1839 = vmatprep.subr.bf16.mxu0 %v1970_v24  ;;  %v2033_v24 = vld [vmem:[%s2120_s21 + $0x248] sm:$0xff]  }
  0x2f   : > { %489 = vmatpush1.bf16.msra.mxu1 %v1971_v25  ;;  %v1432_v25 = vld [vmem:[%s2379_s2] sm:$0xff] }
  0x30   : > { %1840 = vmatpush3.bf16.msra.mxu0 %v1972_v26  ;;  %490 = vmatprep.subr.bf16.mxu1 %v2069_v1  ;;  %v1434_v26 = vld [vmem:[%s2379_s2 + $0x10] sm:$0xff] }
  0x31   : > { %1853 = vmatprep.subr.bf16.mxu0 %v1980_v27  ;;  %v2040_v27 = vld [vmem:[%s2120_s21 + $0x260] sm:$0xff]   ;;  %1438 = vperm.xlu0 %1947, %v1432_v25  }
  0x32   : > { %1448 = vperm.xlu1 %1948, %v1434_v26  }
  0x33   : > { %458 = vmatmul.mubr.bf16.vlgmr.msra.gmra.mrb[0].mxu0 %v2157_v28  ;;  %491 = vmatpush1.bf16.msra.mxu1 %v1976_v29  ;;  %v2042_v29 = vld [vmem:[%s2120_s21 + $0x2a8] sm:$0xff]  }
  0x34   : > { %773 = vmatprep.subr.bf16.mxu1 %v2069_v1  ;;  %1854 = vmatpush3.bf16.msra.mxu0 %v1982_v32  ;;  %v2035_v32 = vld [vmem:[%s2120_s21 + $0x250] sm:$0xff]  }
  0x35   : > { %1855 = vmatprep.subr.bf16.mxu0 %v1983_v33  ;;  %465 = vmatprep.mubr.bf16.mxu0 %v2163_v30  ;;  %v1433_v33 = vld [vmem:[%s2379_s2 + $0x8] sm:$0xff] }
  0x36   : > { %507 = vmatmul.mubr.bf16.vlgmr.msra.gmra.mrb[0].mxu1 %v2169_v31  ;;  %1443 = vperm.xlu0 %1947, %v1433_v33  }
  0x37   : > { %774 = vmatpush1.bf16.msra.mxu1 %v1981_v35  ;;  %1582 = vmatprep.mubr.msk.bf16.mxu1 %vm418_vm0, %v2176_v34  ;;  %v1435_v35 = vld [vmem:[%s2379_s2 + $0x18] sm:$0xff] }
  0x38   : > { %775 = vmatprep.subr.bf16.mxu1 %v2069_v1  ;;  %1856 = vmatpush3.bf16.msra.mxu0 %v1985_v36  ;;  %v2043_v36 = vld [vmem:[%s2120_s21 + $0x268] sm:$0xff]  }
  0x39   : > { %1857 = vmatprep.subr.bf16.mxu0 %v1986_v37  ;;  %v2045_v37 = vld [vmem:[%s2120_s21 + $0x2b0] sm:$0xff]   ;;  %1453 = vperm.xlu1 %1948, %v1435_v35  }
  0x3b   : > { %776 = vmatpush1.bf16.msra.mxu1 %v1984_v39  ;;  %466 = vmatmul.mubr.bf16.gmra.mrb[4].mxu0 %v2188_v38  ;;  %v2038_v39 = vld [vmem:[%s2120_s21 + $0x2d8] sm:$0xff]  }
  0x3c   : > { %777 = vmatprep.subr.bf16.mxu1 %v2069_v1  ;;  %1858 = vmatpush3.bf16.msra.mxu0 %v1988_v40  ;;  %v2046_v40 = vld [vmem:[%s2120_s21 + $0x270] sm:$0xff]  }
  0x3d   : > { %1859 = vmatprep.subr.bf16.mxu0 %v1989_v41  ;;  %756 = vmatprep.mubr.bf16.mxu0 %v2101_v0  ;;  %v2048_v41 = vld [vmem:[%s2120_s21 + $0x2b8] sm:$0xff]  }
  0x3e   : > { %515 = vmatmul.mubr.bf16.gmra.mrb[4].mxu1 %v2199_v42 }
  0x3f   : > { %778 = vmatpush1.bf16.msra.mxu1 %v1987_v43  ;;  %1658 = vmatprep.mubr.msk.bf16.mxu1 %vm418_vm0, %v2111_v2  ;;  %v2041_v43 = vld [vmem:[%s2120_s21 + $0x2e0] sm:$0xff]  }
  0x40   : > { %779 = vmatprep.subr.bf16.mxu1 %v2069_v1  ;;  %1860 = vmatpush3.bf16.msra.mxu0 %v1991_v44  ;;  %v2049_v44 = vld [vmem:[%s2120_s21 + $0x278] sm:$0xff]  }
  0x41   : > { %1861 = vmatprep.subr.bf16.mxu0 %v1992_v45  ;;  %v2051_v45 = vld [vmem:[%s2120_s21 + $0x2c0] sm:$0xff]  }
  0x43   : > { %780 = vmatpush1.bf16.msra.mxu1 %v1990_v46  ;;  %v2052_v46 = vld [vmem:[%s2120_s21 + $0x280] sm:$0xff]  }
  0x44   : > { %781 = vmatprep.subr.bf16.mxu1 %v2069_v1  ;;  %1862 = vmatpush3.bf16.msra.mxu0 %v1994_v47  ;;  %v2054_v47 = vld [vmem:[%s2120_s21 + $0x2c8] sm:$0xff]  }
  0x45   : > { %1863 = vmatprep.subr.bf16.mxu0 %v1995_v48  ;;  %v2047_v48 = vld [vmem:[%s2120_s21 + $0x2f0] sm:$0xff]  }
  0x47   : > { %782 = vmatpush1.bf16.msra.mxu1 %v1993_v49  ;;  %v2055_v49 = vld [vmem:[%s2120_s21 + $0x288] sm:$0xff]  }
  0x48   : > { %783 = vmatprep.subr.bf16.mxu1 %v2069_v1  ;;  %1864 = vmatpush3.bf16.msra.mxu0 %v1997_v50  ;;  %v2057_v50 = vld [vmem:[%s2120_s21 + $0x2d0] sm:$0xff]  }
  0x49   : > { %1865 = vmatprep.subr.bf16.mxu0 %v2003_v51  ;;  %v2050_v51 = vld [vmem:[%s2120_s21 + $0x2f8] sm:$0xff]  }
  0x4b   : > { %784 = vmatpush1.bf16.msra.mxu1 %v1996_v52  ;;  %v2058_v52 = vld [vmem:[%s2120_s21 + $0x290] sm:$0xff]  }
  0x4c   : > { %785 = vmatprep.subr.bf16.mxu1 %v2069_v1  ;;  %1866 = vmatpush3.bf16.msra.mxu0 %v2006_v53  ;;  %v2053_v53 = vld [vmem:[%s2120_s21 + $0x300] sm:$0xff]  }
  0x4d   : > { %1867 = vmatprep.subr.bf16.mxu0 %v2007_v54  ;;  %v2059_v54 = vld [vmem:[%s2120_s21 + $0x310] sm:$0xff]  }
  0x4f   : > { %786 = vmatpush1.bf16.msra.mxu1 %v2004_v55  ;;  %v2060_v55 = vld [vmem:[%s2120_s21 + $0x318] sm:$0xff]  }
  0x50   : > { %787 = vmatprep.subr.bf16.mxu1 %v2069_v1  ;;  %1868 = vmatpush3.bf16.msra.mxu0 %v2009_v56 }
  0x51   : > { %1881 = vmatprep.subr.bf16.mxu0 %v2011_v57 }
  0x53   : > { %788 = vmatpush1.bf16.msra.mxu1 %v2008_v58  ;;  %757 = vmatmul.mubr.bf16.vlgmr.msra.gmra.mrb[8].mxu0 %v2157_v28 }
  0x54   : > { %789 = vmatprep.subr.bf16.mxu1 %v2069_v1  ;;  %1882 = vmatpush3.bf16.msra.mxu0 %v2013_v59 }
  0x55   : > { %764 = vmatprep.mubr.bf16.mxu0 %v2163_v30  ;;  %1883 = vmatprep.subr.bf16.mxu0 %v2014_v60 }
  0x57   : > { %790 = vmatpush1.bf16.msra.mxu1 %v2010_v61 }
  0x58   : > { %1072 = vmatprep.subr.bf16.mxu1 %v2069_v1  ;;  %1884 = vmatpush3.bf16.msra.mxu0 %v2016_v62 }
  0x59   : > { %1885 = vmatprep.subr.bf16.mxu0 %v2017_v63 }
  0x5a   : > { %806 = vmatmul.mubr.bf16.vlgmr.msra.gmra.mrb[8].mxu1 %v2169_v31 }
  0x5b   : > { %1073 = vmatpush1.bf16.msra.mxu1 %v2012_v3  ;;  %765 = vmatmul.mubr.bf16.gmra.mrb[12].mxu0 %v2188_v38 }
  0x5c   : > { %1074 = vmatprep.subr.bf16.mxu1 %v2069_v1  ;;  %1659 = vmatprep.mubr.msk.bf16.mxu1 %vm418_vm0, %v2176_v34 }
  0x5d   : > { %1886 = vmatpush3.bf16.msra.mxu0 %v2019_v4  ;;  %1055 = vmatprep.mubr.bf16.mxu0 %v2101_v0 }
  0x5e   : > { %1887 = vmatprep.subr.bf16.mxu0 %v2020_v5 }
  0x5f   : > { %1075 = vmatpush1.bf16.msra.mxu1 %v2015_v6 }
  0x60   : > { %1076 = vmatprep.subr.bf16.mxu1 %v2069_v1 }
  0x61   : > { %1888 = vmatpush3.bf16.msra.mxu0 %v2022_v7 }
  0x62   : > { %814 = vmatmul.mubr.bf16.gmra.mrb[12].mxu1 %v2199_v42  ;;  %1889 = vmatprep.subr.bf16.mxu0 %v2023_v8 }
  0x63   : > { %1077 = vmatpush1.bf16.msra.mxu1 %v2018_v9  ;;  %1735 = vmatprep.mubr.msk.bf16.mxu1 %vm418_vm0, %v2111_v2 }
  0x64   : > { %1078 = vmatprep.subr.bf16.mxu1 %v2069_v1 }
  0x65   : > { %1890 = vmatpush3.bf16.msra.mxu0 %v2025_v10 }
  0x66   : > { %1891 = vmatprep.subr.bf16.mxu0 %v2026_v11 }
  0x67   : > { %1079 = vmatpush1.bf16.msra.mxu1 %v2021_v12 }
  0x68   : > { %1080 = vmatprep.subr.bf16.mxu1 %v2069_v1 }
  0x69   : > { %1892 = vmatpush3.bf16.msra.mxu0 %v2028_v13 }
  0x6a   : > { %1893 = vmatprep.subr.bf16.mxu0 %v2029_v14 }
  0x6b   : > { %1081 = vmatpush1.bf16.msra.mxu1 %v2024_v15 }
  0x6c   : > { %1082 = vmatprep.subr.bf16.mxu1 %v2069_v1 }
  0x6d   : > { %1894 = vmatpush3.bf16.msra.mxu0 %v2031_v16 }
  0x6e   : > { %1895 = vmatprep.subr.bf16.mxu0 %v2032_v17 }
  0x6f   : > { %1083 = vmatpush1.bf16.msra.mxu1 %v2027_v18 }
  0x70   : > { %1084 = vmatprep.subr.bf16.mxu1 %v2069_v1 }
  0x71   : > { %1896 = vmatpush3.bf16.msra.mxu0 %v2034_v19 }
  0x72   : > { %1909 = vmatprep.subr.bf16.mxu0 %v2036_v20 }
  0x73   : > { %1085 = vmatpush1.bf16.msra.mxu1 %v2030_v21 }
  0x74   : > { %1086 = vmatprep.subr.bf16.mxu1 %v2069_v1  ;;  %1056 = vmatmul.mubr.bf16.vlgmr.msra.gmra.mrb[16].mxu0 %v2157_v28 }
  0x75   : > { %1910 = vmatpush3.bf16.msra.mxu0 %v2037_v22  ;;  %1063 = vmatprep.mubr.bf16.mxu0 %v2163_v30 }
  0x76   : > { %1911 = vmatprep.subr.bf16.mxu0 %v2039_v23 }
  0x77   : > { %1087 = vmatpush1.bf16.msra.mxu1 %v2033_v24 }
  0x78   : > { %1088 = vmatprep.subr.bf16.mxu1 %v2069_v1 }
  0x79   : > { %1912 = vmatpush3.bf16.msra.mxu0 %v2040_v27 }
  0x7a   : > { %1913 = vmatprep.subr.bf16.mxu0 %v2042_v29 }
  0x7b   : > { %1089 = vmatpush1.bf16.msra.mxu1 %v2035_v32 }
  0x7c   : > { %1371 = vmatprep.subr.bf16.mxu1 %v2069_v1  ;;  %1064 = vmatmul.mubr.bf16.gmra.mrb[20].mxu0 %v2188_v38 }
  0x7d   : > { %1914 = vmatpush3.bf16.msra.mxu0 %v2043_v36  ;;  %1354 = vmatprep.mubr.bf16.mxu0 %v2101_v0  ;;  %v2044_v0 = vld [vmem:[%s2120_s21 + $0x2e8] sm:$0xff]  }
  0x7e   : > { %1105 = vmatmul.mubr.bf16.vlgmr.msra.gmra.mrb[16].mxu1 %v2169_v31  ;;  %1915 = vmatprep.subr.bf16.mxu0 %v2045_v37 }
  0x7f   : > { %1372 = vmatpush1.bf16.msra.mxu1 %v2038_v39  ;;  %1736 = vmatprep.mubr.msk.bf16.mxu1 %vm418_vm0, %v2176_v34 }
  0x80   : > { %1373 = vmatprep.subr.bf16.mxu1 %v2069_v1 }
  0x81   : > { %1916 = vmatpush3.bf16.msra.mxu0 %v2046_v40 }
  0x82   : > { %1917 = vmatprep.subr.bf16.mxu0 %v2048_v41 }
  0x83   : > { %1374 = vmatpush1.bf16.msra.mxu1 %v2041_v43 }
  0x84   : > { %1375 = vmatprep.subr.bf16.mxu1 %v2069_v1 }
  0x85   : > { %1918 = vmatpush3.bf16.msra.mxu0 %v2049_v44 }
  0x86   : > { %1919 = vmatprep.subr.bf16.mxu0 %v2051_v45  ;;  %1113 = vmatmul.mubr.bf16.gmra.mrb[20].mxu1 %v2199_v42 }
  0x87   : > { %1376 = vmatpush1.bf16.msra.mxu1 %v2044_v0  ;;  %1812 = vmatprep.mubr.msk.bf16.mxu1 %vm418_vm0, %v2111_v2  ;;  %v2056_v2 = vld [vmem:[%s2120_s21 + $0x308] sm:$0xff]  }
  0x88   : > { %1377 = vmatprep.subr.bf16.mxu1 %v2069_v1 }
  0x89   : > { %1920 = vmatpush3.bf16.msra.mxu0 %v2052_v46 }
  0x8a   : > { %1921 = vmatprep.subr.bf16.mxu0 %v2054_v47 }
  0x8b   : > { %1378 = vmatpush1.bf16.msra.mxu1 %v2047_v48 }
  0x8c   : > { %1379 = vmatprep.subr.bf16.mxu1 %v2069_v1 }
  0x8d   : > { %1922 = vmatpush3.bf16.msra.mxu0 %v2055_v49 }
  0x8e   : > { %1923 = vmatprep.subr.bf16.mxu0 %v2057_v50 }
  0x8f   : > { %1380 = vmatpush1.bf16.msra.mxu1 %v2050_v51 }
  0x90   : > { %1381 = vmatprep.subr.bf16.mxu1 %v2069_v1 }
  0x91   : > { %1924 = vmatpush3.bf16.msra.mxu0 %v2058_v52 }
  0x93   : > { %1382 = vmatpush1.bf16.msra.mxu1 %v2053_v53 }
  0x94   : > { %1383 = vmatprep.subr.bf16.mxu1 %v2069_v1  ;;  %1355 = vmatmul.mubr.bf16.vlgmr.msra.gmra.mrb[24].mxu0 %v2157_v28 }
  0x95   : > { %1362 = vmatprep.mubr.bf16.mxu0 %v2163_v30 }
  0x97   : > { %1384 = vmatpush1.bf16.msra.mxu1 %v2056_v2 }
  0x98   : > { %1385 = vmatprep.subr.bf16.mxu1 %v2069_v1 }
  0x9b   : > { %1386 = vmatpush1.bf16.msra.mxu1 %v2059_v54 }
  0x9c   : > { %1387 = vmatprep.subr.bf16.mxu1 %v2069_v1  ;;  %1363 = vmatmul.mubr.bf16.gmra.mrb[28].mxu0 %v2188_v38 }
  0x9f   : > { %1388 = vmatpush1.bf16.msra.mxu1 %v2060_v55 }
  0xa2   : > { %1404 = vmatmul.mubr.bf16.vlgmr.msra.gmra.mrb[24].mxu1 %v2169_v31 }
  0xa3   : > { %1813 = vmatprep.mubr.msk.bf16.mxu1 %vm418_vm0, %v2176_v34 }
  0xaa   : > { %1412 = vmatmul.mubr.bf16.gmra.mrb[28].mxu1 %v2199_v42 }
 0x106   : > { %v1841_v28 = vpop.f32.mrb[0].mxu0 }
 0x107   : > { %v1842_v30 = vpop.f32.mrb[1].mxu0 }
 0x108   : > { %v1843_v56 = vadd.f32 %v1842_v30, %v1841_v28  ;;  %v1844_v57 = vpop.f32.mrb[2].mxu0 }
 0x109   : > { %v1845_v58 = vpop.f32.mrb[3].mxu0  ;;  %v508_v59 = vpop.f32.mrb[0].mxu1 }
 0x10a   : > { %v1846_v60 = vadd.f32 %v1845_v58, %v1844_v57  ;;  %v2336_v61 = vadd.f32 %v1843_v56, %v508_v59  ;;  %v510_v1 = vpop.f32.mrb[1].mxu1 }
 0x10b   : > { %v511_v62 = vpop.f32.mrb[2].mxu1 }
 0x10c   : > { %v2338_v38 = vadd.f32 %v1846_v60, %v511_v62  ;;  %v513_v63 = vpop.f32.mrb[3].mxu1 }
 0x10e   : > { %v1847_v31 = vpop.f32.mrb[4].mxu0 }
 0x10f   : > { %v1848_v3 = vpop.f32.mrb[5].mxu0 }
 0x110   : > { %v1849_v4 = vadd.f32 %v1848_v3, %v1847_v31  ;;  %v1850_v34 = vpop.f32.mrb[6].mxu0 }
 0x111   : > { %v516_v5 = vpop.f32.mrb[4].mxu1  ;;  %v1851_v42 = vpop.f32.mrb[7].mxu0 }
 0x112   : > { %v2340_v6 = vadd.f32 %v1849_v4, %v516_v5  ;;  %v1852_v7 = vadd.f32 %v1851_v42, %v1850_v34  ;;  %v518_v8 = vpop.f32.mrb[5].mxu1 }
 0x113   : > { %v519_v9 = vpop.f32.mrb[6].mxu1 }
 0x114   : > { %v2342_v10 = vadd.f32 %v1852_v7, %v519_v9  ;;  %v521_v11 = vpop.f32.mrb[7].mxu1 }
 0x126   : > { %v1869_v12 = vpop.f32.mrb[8].mxu0 }
 0x127   : > { %v1870_v13 = vpop.f32.mrb[9].mxu0 }
 0x128   : > { %v1871_v14 = vadd.f32 %v1870_v13, %v1869_v12  ;;  %v1872_v15 = vpop.f32.mrb[10].mxu0 }
 0x129   : > { %v1873_v16 = vpop.f32.mrb[11].mxu0 }
 0x12a   : > { %v1874_v17 = vadd.f32 %v1873_v16, %v1872_v15  ;;  %v1439_v15 = vpop.permute.xlu0 %1438 }
 0x12d   : > { %v807_v18 = vpop.f32.mrb[8].mxu1 }
 0x12e   : > { %v2344_v19 = vadd.f32 %v1871_v14, %v807_v18  ;;  %v809_v20 = vpop.f32.mrb[9].mxu1  ;;  %v1875_v21 = vpop.f32.mrb[12].mxu0 }
 0x12f   : > { %v810_v22 = vpop.f32.mrb[10].mxu1  ;;  %v1876_v23 = vpop.f32.mrb[13].mxu0 }
 0x130   : > { %v1420_v24 = vmax.f32 %v2336_v61, %v2344_v19  ;;  %v2348_v25 = vadd.f32 %v1874_v17, %v810_v22  ;;  %v812_v26 = vpop.f32.mrb[11].mxu1  ;;  %v1877_v27 = vadd.f32 %v1876_v23, %v1875_v21  ;;  %v1878_v29 = vpop.f32.mrb[14].mxu0 }
 0x131   : > { %v1879_v32 = vpop.f32.mrb[15].mxu0 }
 0x132   : > { %v1421_v33 = vmax.f32 %v2338_v38, %v2348_v25  ;;  %v1880_v35 = vadd.f32 %v1879_v32, %v1878_v29  ;;  %v1444_v25 = vpop.permute.xlu0 %1443 }
 0x135   : > { %v815_v36 = vpop.f32.mrb[12].mxu1 }
 0x136   : > { %v2352_v37 = vadd.f32 %v1877_v27, %v815_v36  ;;  %v817_v39 = vpop.f32.mrb[13].mxu1 }
 0x137   : > { %v818_v40 = vpop.f32.mrb[14].mxu1 }
 0x138   : > { %v1422_v41 = vmax.f32 %v2340_v6, %v2352_v37  ;;  %v2356_v43 = vadd.f32 %v1880_v35, %v818_v40  ;;  %v820_v44 = vpop.f32.mrb[15].mxu1  ;;  %v1449_v40 = vpop.permute.xlu1 %1448 }
 0x13a   : > { %v1423_v45 = vmax.f32 %v2342_v10, %v2356_v43 }
 0x147   : > { %v1897_v0 = vpop.f32.mrb[16].mxu0 }
 0x148   : > { %v1898_v46 = vpop.f32.mrb[17].mxu0 }
 0x149   : > { %v1899_v47 = vadd.f32 %v1898_v46, %v1897_v0  ;;  %v1900_v48 = vpop.f32.mrb[18].mxu0 }
 0x14a   : > { %v1901_v49 = vpop.f32.mrb[19].mxu0 }
 0x14b   : > { %v1902_v50 = vadd.f32 %v1901_v49, %v1900_v48 }
 0x14f   : > { %v1903_v51 = vpop.f32.mrb[20].mxu0 }
 0x150   : > { %v1904_v52 = vpop.f32.mrb[21].mxu0 }
 0x151   : > { %v1106_v53 = vpop.f32.mrb[16].mxu1  ;;  %v1905_v2 = vadd.f32 %v1904_v52, %v1903_v51  ;;  %v1906_v54 = vpop.f32.mrb[22].mxu0 }
 0x152   : > { %v1107_v55 = vadd.f32 %v1899_v47, %v1106_v53  ;;  %v1108_v28 = vpop.f32.mrb[17].mxu1  ;;  %v1907_v30 = vpop.f32.mrb[23].mxu0 }
 0x153   : > { %v1109_v56 = vpop.f32.mrb[18].mxu1  ;;  %v1908_v57 = vadd.f32 %v1907_v30, %v1906_v54  ;;  %v1454_v53 = vpop.permute.xlu1 %1453 }
 0x154   : > { %v1110_v58 = vadd.f32 %v1902_v50, %v1109_v56  ;;  %v1111_v59 = vpop.f32.mrb[19].mxu1 }
 0x159   : > { %v1114_v60 = vpop.f32.mrb[20].mxu1 }
 0x15a   : > { %v1115_v61 = vadd.f32 %v1905_v2, %v1114_v60  ;;  %v1116_v1 = vpop.f32.mrb[21].mxu1 }
 0x15b   : > { %v1117_v62 = vpop.f32.mrb[22].mxu1 }
 0x15c   : > { %v1118_v38 = vadd.f32 %v1908_v57, %v1117_v62  ;;  %v1119_v63 = vpop.f32.mrb[23].mxu1 }
 0x167   : > { %v1925_v31 = vpop.f32.mrb[24].mxu0 }
 0x168   : > { %v1926_v3 = vpop.f32.mrb[25].mxu0 }
 0x169   : > { %v1927_v4 = vadd.f32 %v1926_v3, %v1925_v31  ;;  %v1928_v34 = vpop.f32.mrb[26].mxu0 }
 0x16a   : > { %v1929_v5 = vpop.f32.mrb[27].mxu0 }
 0x16b   : > { %v1930_v42 = vadd.f32 %v1929_v5, %v1928_v34 }
 0x16f   : > { %v1931_v7 = vpop.f32.mrb[28].mxu0 }
 0x170   : > { %v1932_v8 = vpop.f32.mrb[29].mxu0 }
 0x171   : > { %v1933_v9 = vadd.f32 %v1932_v8, %v1931_v7  ;;  %v1934_v11 = vpop.f32.mrb[30].mxu0 }
 0x172   : > { %v1935_v12 = vpop.f32.mrb[31].mxu0 }
 0x173   : > { %v1936_v13 = vadd.f32 %v1935_v12, %v1934_v11 }
 0x175   : > { %v1405_v14 = vpop.f32.mrb[24].mxu1 }
 0x176   : > { %v1406_v16 = vadd.f32 %v1927_v4, %v1405_v14  ;;  %v1407_v17 = vpop.f32.mrb[25].mxu1 }
 0x177   : > { %v1408_v18 = vpop.f32.mrb[26].mxu1 }
 0x178   : > { %v1424_v19 = vmax.f32 %v1107_v55, %v1406_v16  ;;  %v1409_v20 = vadd.f32 %v1930_v42, %v1408_v18  ;;  %v1410_v21 = vpop.f32.mrb[27].mxu1 }
 0x17a   : > { %v1425_v22 = vmax.f32 %v1110_v58, %v1409_v20  ;;  %v1428_v23 = vmax.f32 %v1420_v24, %v1424_v19 }
 0x17c   : > { %v1456_v26 = vadd.f32 %v1439_v15, %v1428_v23  ;;  %v1429_v27 = vmax.f32 %v1421_v33, %v1425_v22 }
 0x17d   : > { %v1413_v29 = vpop.f32.mrb[28].mxu1 }
 0x17e   : > { %v1460_v32 = vmax.f32 %v1456_v26, 0.0  ;;  %v1457_v35 = vadd.f32 %v1444_v25, %v1429_v27  ;;  %v1414_v36 = vadd.f32 %v1933_v9, %v1413_v29  ;;  %v1415_v39 = vpop.f32.mrb[29].mxu1 }
 0x17f   : > { %v1416_v44 = vpop.f32.mrb[30].mxu1 }
 0x180   : > { %v1821_v0 = vpack.c.bf16 %v1460_v32, %v1460_v32  ;;  %v1461_v46 = vmax.f32 %v1457_v35, 0.0  ;;  %v1426_v47 = vmax.f32 %v1115_v61, %v1414_v36  ;;  %v1417_v24 = vadd.f32 %v1936_v13, %v1416_v44  ;;  %v1418_v48 = vpop.f32.mrb[31].mxu1 }
 0x182   : > { %1481 = vst.msk [vmem:[%s170_s20] sm:$0xf] %vm1480_vm1, %v1821_v0  ;;  %v1822_v33 = vpack.c.bf16 %v1461_v46, %v1461_v46  ;;  %v1430_v49 = vmax.f32 %v1422_v41, %v1426_v47  ;;  %v1427_v50 = vmax.f32 %v1118_v38, %v1417_v24 }
 0x184   : > { %1482 = vst.msk [vmem:[%s170_s20 + $0x4] sm:$0xf] %vm1480_vm1, %v1822_v33  ;;  %v1458_v51 = vadd.f32 %v1449_v40, %v1430_v49  ;;  %v1431_v52 = vmax.f32 %v1423_v45, %v1427_v50 }
 0x186   : > { %v1462_v2 = vmax.f32 %v1458_v51, 0.0  ;;  %v1459_v54 = vadd.f32 %v1454_v53, %v1431_v52 }
 0x188   : > { %v1823_v55 = vpack.c.bf16 %v1462_v2, %v1462_v2  ;;  %v1463_v28 = vmax.f32 %v1459_v54, 0.0 }
 0x18a   : > { %1483 = vst.msk [vmem:[%s170_s20 + $0x8] sm:$0xf] %vm1480_vm1, %v1823_v55  ;;  %v1824_v30 = vpack.c.bf16 %v1463_v28, %v1463_v28 }
 0x18c   : > { %1484 = vst.msk [vmem:[%s170_s20 + $0xc] sm:$0xf] %vm1480_vm1, %v1824_v30 }
 0x18d PF: > { %s13_s12 = sadd.s32 1, %s2067_s12  }
 0x18e   : > { %p10_p4 = scmp.ge.s32.totalorder %s13_s12, 4  }
 0x190   :  { %12 = sbr.rel (!%p10_p4) target bundleno = 1 (0x1), region = 65 }

// kernel: cnn_forward.5
= control target key start
LH: loop header
LB: loop body
LE: loop exit
PB: predicated region body
PF: predicated region fallthrough
CT: control target
= control target key end

     0   :  { %12 = vsyncpa [#allocation3], 0  ;;  %v236_v29 = vlaneseq  ;;  %v1806_v35 = vmov 1966171168   ;;  %s2221_s0 = inlined_call_operand.vmem [shape: bf16[2,1568], index: 0, kind: input, shape index: {}]   ;;  %s2222_s1 = inlined_call_operand.vmem [shape: bf16[1568,128], index: 1, kind: input, shape index: {}]   ;;  %s2223_s2 = inlined_call_operand.vmem [shape: f32[1,128], index: 2, kind: input, shape index: {}]   ;;  %s2224_s3 = inlined_call_operand.vmem [shape: bf16[128,10], index: 3, kind: input, shape index: {}]   ;;  %s2225_s4 = inlined_call_operand.vmem [shape: f32[1,10], index: 4, kind: input, shape index: {}]   ;;  %s2226_s5 = inlined_call_operand.hbm [shape: f32[2,10], index: 5, kind: output, shape index: {0}]   ;;  %s2227_s6 = inlined_call_operand.hbm [shape: f32[2,128], index: 6, kind: output, shape index: {1}]  }
   0x1   :  { %v1646_v0 = vld [vmem:[%s2222_s1 + $0x40] sm:$0xff]   ;;  %v1650_v4 = vld [vmem:[%s2222_s1 + $0x48] sm:$0xff]   ;;  %v1654_v8 = vld [vmem:[%s2222_s1 + $0x50] sm:$0xff]   ;;  %v234_v36 = vunpack.c.l.s4 %v1806_v35 }
   0x2   :  { %v1647_v1 = vld [vmem:[%s2222_s1] sm:$0xff]   ;;  %1469 = vmatprep.subr.bf16.mxu0 %v1646_v0  ;;  %v1651_v5 = vld [vmem:[%s2222_s1 + $0x8] sm:$0xff]   ;;  %v1655_v9 = vld [vmem:[%s2222_s1 + $0x10] sm:$0xff]   ;;  %v237_v33 = vshrl.u32 %v236_v29, 7 }
   0x3   :  { %v1648_v2 = vld [vmem:[%s2222_s1 + $0xc0] sm:$0xff]   ;;  %1470 = vmatpush3.bf16.msra.mxu0 %v1647_v1  ;;  %v1652_v6 = vld [vmem:[%s2222_s1 + $0xc8] sm:$0xff]   ;;  %v1656_v10 = vld [vmem:[%s2222_s1 + $0xd0] sm:$0xff]   ;;  %v235_v39 = vunpack.c.0.s8 %v234_v36 }
   0x4   :  { %v1649_v3 = vld [vmem:[%s2222_s1 + $0x80] sm:$0xff]   ;;  %1491 = vmatprep.subr.bf16.mxu1 %v1648_v2  ;;  %1471 = vmatprep.subr.bf16.mxu0 %v1650_v4  ;;  %v1653_v7 = vld [vmem:[%s2222_s1 + $0x88] sm:$0xff]   ;;  %v1657_v11 = vld [vmem:[%s2222_s1 + $0x90] sm:$0xff]  }
   0x5   :  { %1492 = vmatpush3.bf16.msra.mxu1 %v1649_v3  ;;  %v1658_v12 = vld [vmem:[%s2222_s1 + $0x58] sm:$0xff]   ;;  %v1662_v16 = vld [vmem:[%s2222_s1 + $0x60] sm:$0xff]   ;;  %v1666_v20 = vld [vmem:[%s2222_s1 + $0x68] sm:$0xff]   ;;  %v1951_v41 = vsub.s32 %v235_v39, %v237_v33 }
   0x6   :  { %1493 = vmatprep.subr.bf16.mxu1 %v1652_v6  ;;  %v1659_v13 = vld [vmem:[%s2222_s1 + $0x18] sm:$0xff]   ;;  %v1663_v17 = vld [vmem:[%s2222_s1 + $0x20] sm:$0xff]   ;;  %v1667_v21 = vld [vmem:[%s2222_s1 + $0x28] sm:$0xff]  }
   0x7   :  { %1472 = vmatpush3.bf16.msra.mxu0 %v1651_v5  ;;  %v1660_v14 = vld [vmem:[%s2222_s1 + $0xd8] sm:$0xff]   ;;  %v1664_v18 = vld [vmem:[%s2222_s1 + $0xe0] sm:$0xff]   ;;  %v1668_v22 = vld [vmem:[%s2222_s1 + $0xe8] sm:$0xff]  }
   0x8   :  { %1473 = vmatprep.subr.bf16.mxu0 %v1654_v8  ;;  %v1661_v15 = vld [vmem:[%s2222_s1 + $0x98] sm:$0xff]   ;;  %v1665_v19 = vld [vmem:[%s2222_s1 + $0xa0] sm:$0xff]   ;;  %v1669_v23 = vld [vmem:[%s2222_s1 + $0xa8] sm:$0xff]  }
   0x9   :  { %1494 = vmatpush3.bf16.msra.mxu1 %v1653_v7  ;;  %v1670_v24 = vld [vmem:[%s2222_s1 + $0x70] sm:$0xff]   ;;  %v1674_v28 = vld [vmem:[%s2222_s1 + $0x78] sm:$0xff]   ;;  %v1679_v34 = vld [vmem:[%s2222_s1 + $0x140] sm:$0xff]  }
   0xa   :  { %1495 = vmatprep.subr.bf16.mxu1 %v1656_v10  ;;  %v1671_v25 = vld [vmem:[%s2222_s1 + $0x30] sm:$0xff]   ;;  %v1675_v30 = vld [vmem:[%s2222_s1 + $0x38] sm:$0xff]   ;;  %v25_v37 = vld [vmem:[%s2221_s0] sm:$0xff] }
   0xb   :  { %1474 = vmatpush3.bf16.msra.mxu0 %v1655_v9  ;;  %v1672_v26 = vld [vmem:[%s2222_s1 + $0xf0] sm:$0xff]   ;;  %v1676_v31 = vld [vmem:[%s2222_s1 + $0xf8] sm:$0xff]   ;;  %v232_v38 = vcombine.high %v25_v37, %v25_v37  ;;  %v1681_v40 = vld [vmem:[%s2222_s1 + $0x1c0] sm:$0xff]   ;;  %v239_v42 = vrot.slane %v25_v37, %v1951_v41 }
   0xc   :  { %1475 = vmatprep.subr.bf16.mxu0 %v1658_v12  ;;  %v1673_v27 = vld [vmem:[%s2222_s1 + $0xb0] sm:$0xff]   ;;  %v1677_v32 = vld [vmem:[%s2222_s1 + $0xb8] sm:$0xff]   ;;  %v1680_v47 = vld [vmem:[%s2222_s1 + $0x100] sm:$0xff]  }
   0xd   :  { %1496 = vmatpush3.bf16.msra.mxu1 %v1657_v11  ;;  %v1955_v43 = vrot.slane %v232_v38, %v1951_v41  ;;  %v247_v44 = vcombine.high %v239_v42, %v239_v42  ;;  %v255_v45 = vrot.slane %v239_v42, %v1951_v41  ;;  %v1682_v49 = vld [vmem:[%s2222_s1 + $0x180] sm:$0xff]   ;;  %v1683_v52 = vld [vmem:[%s2222_s1 + $0x148] sm:$0xff]   ;;  %v1687_v58 = vld [vmem:[%s2222_s1 + $0x150] sm:$0xff]  }
   0xe   :  { %1497 = vmatprep.subr.bf16.mxu1 %v1660_v14  ;;  %v1684_v54 = vld [vmem:[%s2222_s1 + $0x108] sm:$0xff]   ;;  %v1688_v59 = vld [vmem:[%s2222_s1 + $0x110] sm:$0xff]   ;;  %v1691_v62 = vld [vmem:[%s2222_s1 + $0x158] sm:$0xff]  }
   0xf   :  { %1476 = vmatpush3.bf16.msra.mxu0 %v1659_v13  ;;  %v248_v46 = vcombine.high %v1955_v43, %v1955_v43  ;;  %v269_v48 = vrot.slane %v247_v44, %v1951_v41  ;;  %v277_v51 = vcombine.high %v255_v45, %v255_v45  ;;  %v1685_v55 = vld [vmem:[%s2222_s1 + $0x1c8] sm:$0xff]   ;;  %v1689_v60 = vld [vmem:[%s2222_s1 + $0x1d0] sm:$0xff]   ;;  %v1692_v63 = vld [vmem:[%s2222_s1 + $0x118] sm:$0xff]  }
  0x10   :  { %1477 = vmatprep.subr.bf16.mxu0 %v1662_v16  ;;  %v1686_v57 = vld [vmem:[%s2222_s1 + $0x188] sm:$0xff]   ;;  %v1690_v61 = vld [vmem:[%s2222_s1 + $0x190] sm:$0xff]   ;;  %v1693_v0 = vld [vmem:[%s2222_s1 + $0x1d8] sm:$0xff]  }
  0x11   :  { %1498 = vmatpush3.bf16.msra.mxu1 %v1661_v15  ;;  %v276_v50 = vrot.slane %v248_v46, %v1951_v41  ;;  %956 = vmatprep.mubr.bf16.mxu0 %v269_v48  ;;  %v279_v53 = vcombine.high %v269_v48, %v269_v48  ;;  %v1694_v1 = vld [vmem:[%s2222_s1 + $0x198] sm:$0xff]   ;;  %v1695_v2 = vld [vmem:[%s2222_s1 + $0x160] sm:$0xff]   ;;  %v1699_v6 = vld [vmem:[%s2222_s1 + $0x168] sm:$0xff]  }
  0x12   :  { %1499 = vmatprep.subr.bf16.mxu1 %v1664_v18  ;;  %v1696_v3 = vld [vmem:[%s2222_s1 + $0x120] sm:$0xff]   ;;  %v1700_v7 = vld [vmem:[%s2222_s1 + $0x128] sm:$0xff]   ;;  %v1703_v10 = vld [vmem:[%s2222_s1 + $0x170] sm:$0xff]   ;;  %v262_v18 = vrot.slane %v1955_v43, %v1951_v41 }
  0x13   :  { %1478 = vmatpush3.bf16.msra.mxu0 %v1663_v17  ;;  %v280_v56 = vcombine.high %v276_v50, %v276_v50  ;;  %996 = vmatprep.mubr.bf16.mxu1 %v279_v53  ;;  %v1697_v4 = vld [vmem:[%s2222_s1 + $0x1e0] sm:$0xff]   ;;  %v1701_v8 = vld [vmem:[%s2222_s1 + $0x1e8] sm:$0xff]   ;;  %v1704_v11 = vld [vmem:[%s2222_s1 + $0x130] sm:$0xff]  }
  0x14   :  { %1479 = vmatprep.subr.bf16.mxu0 %v1666_v20  ;;  %v1698_v5 = vld [vmem:[%s2222_s1 + $0x1a0] sm:$0xff]   ;;  %v1702_v9 = vld [vmem:[%s2222_s1 + $0x1a8] sm:$0xff]   ;;  %v1705_v12 = vld [vmem:[%s2222_s1 + $0x1f0] sm:$0xff]  }
  0x15   :  { %1500 = vmatpush3.bf16.msra.mxu1 %v1665_v19  ;;  %v1706_v13 = vld [vmem:[%s2222_s1 + $0x1b0] sm:$0xff]   ;;  %v1707_v14 = vld [vmem:[%s2222_s1 + $0x178] sm:$0xff]   ;;  %v1711_v19 = vld [vmem:[%s2222_s1 + $0x240] sm:$0xff]  }
  0x16   :  { %1501 = vmatprep.subr.bf16.mxu1 %v1668_v22  ;;  %v1708_v15 = vld [vmem:[%s2222_s1 + $0x138] sm:$0xff]   ;;  %v1712_v20 = vld [vmem:[%s2222_s1 + $0x200] sm:$0xff]   ;;  %v1720_v29 = vld [vmem:[%s2222_s1 + $0x210] sm:$0xff]  }
  0x17   :  { %1480 = vmatpush3.bf16.msra.mxu0 %v1667_v21  ;;  %v1709_v16 = vld [vmem:[%s2222_s1 + $0x1f8] sm:$0xff]   ;;  %v1713_v21 = vld [vmem:[%s2222_s1 + $0x2c0] sm:$0xff]   ;;  %v1732_v42 = vld [vmem:[%s2222_s1 + $0x228] sm:$0xff]  }
  0x18   :  { %1481 = vmatprep.subr.bf16.mxu0 %v1670_v24  ;;  %v1710_v17 = vld [vmem:[%s2222_s1 + $0x1b8] sm:$0xff]   ;;  %v1714_v22 = vld [vmem:[%s2222_s1 + $0x280] sm:$0xff]   ;;  %v1715_v24 = vld [vmem:[%s2222_s1 + $0x248] sm:$0xff]  }
  0x19   :  { %1502 = vmatpush3.bf16.msra.mxu1 %v1669_v23  ;;  %v278_v23 = vcombine.high %v262_v18, %v262_v18  ;;  %v1724_v33 = vld [vmem:[%s2222_s1 + $0x218] sm:$0xff]   ;;  %v1727_v36 = vld [vmem:[%s2222_s1 + $0x260] sm:$0xff]   ;;  %v1733_v43 = vld [vmem:[%s2222_s1 + $0x2e8] sm:$0xff]  }
  0x1a   :  { %1503 = vmatprep.subr.bf16.mxu1 %v1672_v26  ;;  %v1717_v26 = vld [vmem:[%s2222_s1 + $0x2c8] sm:$0xff]   ;;  %v1726_v35 = vld [vmem:[%s2222_s1 + $0x298] sm:$0xff]   ;;  %v1728_v37 = vld [vmem:[%s2222_s1 + $0x220] sm:$0xff]  }
  0x1b   :  { %1482 = vmatpush3.bf16.msra.mxu0 %v1671_v25  ;;  %v1716_v25 = vld [vmem:[%s2222_s1 + $0x208] sm:$0xff]   ;;  %v1729_v38 = vld [vmem:[%s2222_s1 + $0x2e0] sm:$0xff]   ;;  %v1737_v48 = vld [vmem:[%s2222_s1 + $0x2f0] sm:$0xff]  }
  0x1c   :  { %1483 = vmatprep.subr.bf16.mxu0 %v1674_v28  ;;  %v1719_v28 = vld [vmem:[%s2222_s1 + $0x250] sm:$0xff]   ;;  %v1730_v39 = vld [vmem:[%s2222_s1 + $0x2a0] sm:$0xff]   ;;  %v1734_v44 = vld [vmem:[%s2222_s1 + $0x2a8] sm:$0xff]  }
  0x1d   :  { %1504 = vmatpush3.bf16.msra.mxu1 %v1673_v27  ;;  %v1718_v27 = vld [vmem:[%s2222_s1 + $0x288] sm:$0xff]   ;;  %v1741_v53 = vld [vmem:[%s2222_s1 + $0x2f8] sm:$0xff]  }
  0x1e   :  { %1505 = vmatprep.subr.bf16.mxu1 %v1676_v31  ;;  %v1722_v31 = vld [vmem:[%s2222_s1 + $0x290] sm:$0xff]   ;;  %v26_v46 = vld [vmem:[%s2221_s0 + $0x8] sm:$0x1f] }
  0x1f   :  { %1484 = vmatpush3.bf16.msra.mxu0 %v1675_v30  ;;  %v1721_v30 = vld [vmem:[%s2222_s1 + $0x2d0] sm:$0xff]  }
  0x20   :  { %1513 = vmatprep.subr.bf16.mxu0 %v1679_v34  ;;  %v1725_v34 = vld [vmem:[%s2222_s1 + $0x2d8] sm:$0xff]  }
  0x21   :  { %1506 = vmatpush3.bf16.msra.mxu1 %v1677_v32  ;;  %v1723_v32 = vld [vmem:[%s2222_s1 + $0x258] sm:$0xff]  }
  0x22   :  { %1535 = vmatprep.subr.bf16.mxu1 %v1681_v40  ;;  %957 = vmatmul.mubr.bf16.vlgmr.msra.gmra.mrb[0].mxu0 %v255_v45  ;;  %v1731_v40 = vld [vmem:[%s2222_s1 + $0x268] sm:$0xff]   ;;  %v1735_v45 = vld [vmem:[%s2222_s1 + $0x270] sm:$0xff]  }
  0x23   :  { %1514 = vmatpush3.bf16.msra.mxu0 %v1680_v47  ;;  %1036 = vmatprep.mubr.bf16.mxu0 %v276_v50  ;;  %v1736_v47 = vld [vmem:[%s2222_s1 + $0x230] sm:$0xff]   ;;  %v1739_v50 = vld [vmem:[%s2222_s1 + $0x278] sm:$0xff]  }
  0x24   :  { %997 = vmatmul.mubr.bf16.vlgmr.msra.gmra.mrb[0].mxu1 %v277_v51  ;;  %1515 = vmatprep.subr.bf16.mxu0 %v1683_v52  ;;  %v1738_v51 = vld [vmem:[%s2222_s1 + $0x2b0] sm:$0xff]  }
  0x25   :  { %1536 = vmatpush3.bf16.msra.mxu1 %v1682_v49  ;;  %1076 = vmatprep.mubr.bf16.mxu1 %v280_v56  ;;  %v288_v49 = vrot.slane %v26_v46, %v1951_v41 }
  0x26   :  { %1537 = vmatprep.subr.bf16.mxu1 %v1685_v55 }
  0x27   :  { %1516 = vmatpush3.bf16.msra.mxu0 %v1684_v54  ;;  %v296_v52 = vcombine.high %v288_v49, %v288_v49  ;;  %v1740_v54 = vld [vmem:[%s2222_s1 + $0x238] sm:$0xff]  }
  0x28   :  { %1517 = vmatprep.subr.bf16.mxu0 %v1687_v58 }
  0x29   :  { %1538 = vmatpush3.bf16.msra.mxu1 %v1686_v57  ;;  %v317_v55 = vrot.slane %v296_v52, %v1951_v41  ;;  %v303_v57 = vrot.slane %v288_v49, %v1951_v41 }
  0x2a   :  { %1539 = vmatprep.subr.bf16.mxu1 %v1689_v60 }
  0x2b   :  { %1518 = vmatpush3.bf16.msra.mxu0 %v1688_v59  ;;  %v319_v56 = vcombine.high %v317_v55, %v317_v55 }
  0x2c   :  { %1519 = vmatprep.subr.bf16.mxu0 %v1691_v62 }
  0x2d   :  { %1540 = vmatpush3.bf16.msra.mxu1 %v1690_v61 }
  0x2e   :  { %1541 = vmatprep.subr.bf16.mxu1 %v1693_v0 }
  0x2f   :  { %1520 = vmatpush3.bf16.msra.mxu0 %v1692_v63 }
  0x30   :  { %1521 = vmatprep.subr.bf16.mxu0 %v1695_v2 }
  0x31   :  { %1542 = vmatpush3.bf16.msra.mxu1 %v1694_v1 }
  0x32   :  { %1543 = vmatprep.subr.bf16.mxu1 %v1697_v4 }
  0x33   :  { %1522 = vmatpush3.bf16.msra.mxu0 %v1696_v3 }
  0x34   :  { %1523 = vmatprep.subr.bf16.mxu0 %v1699_v6 }
  0x35   :  { %1544 = vmatpush3.bf16.msra.mxu1 %v1698_v5 }
  0x36   :  { %1545 = vmatprep.subr.bf16.mxu1 %v1701_v8 }
  0x37   :  { %1524 = vmatpush3.bf16.msra.mxu0 %v1700_v7 }
  0x38   :  { %1525 = vmatprep.subr.bf16.mxu0 %v1703_v10 }
  0x39   :  { %1546 = vmatpush3.bf16.msra.mxu1 %v1702_v9 }
  0x3a   :  { %1547 = vmatprep.subr.bf16.mxu1 %v1705_v12 }
  0x3b   :  { %1526 = vmatpush3.bf16.msra.mxu0 %v1704_v11 }
  0x3c   :  { %1527 = vmatprep.subr.bf16.mxu0 %v1707_v14 }
  0x3d   :  { %1548 = vmatpush3.bf16.msra.mxu1 %v1706_v13 }
  0x3e   :  { %1549 = vmatprep.subr.bf16.mxu1 %v1709_v16 }
  0x3f   :  { %1528 = vmatpush3.bf16.msra.mxu0 %v1708_v15 }
  0x40   :  { %1557 = vmatprep.subr.bf16.mxu0 %v1711_v19 }
  0x41   :  { %1550 = vmatpush3.bf16.msra.mxu1 %v1710_v17 }
  0x42   :  { %1037 = vmatmul.mubr.bf16.vlgmr.msra.gmra.mrb[4].mxu0 %v262_v18  ;;  %1579 = vmatprep.subr.bf16.mxu1 %v1713_v21 }
  0x43   :  { %1558 = vmatpush3.bf16.msra.mxu0 %v1712_v20  ;;  %1116 = vmatprep.mubr.bf16.mxu0 %v317_v55 }
  0x44   :  { %1077 = vmatmul.mubr.bf16.vlgmr.msra.gmra.mrb[4].mxu1 %v278_v23  ;;  %1559 = vmatprep.subr.bf16.mxu0 %v1715_v24 }
  0x45   :  { %1580 = vmatpush3.bf16.msra.mxu1 %v1714_v22 }
  0x46   :  { %1581 = vmatprep.subr.bf16.mxu1 %v1717_v26 }
  0x47   :  { %1560 = vmatpush3.bf16.msra.mxu0 %v1716_v25 }
  0x48   :  { %1561 = vmatprep.subr.bf16.mxu0 %v1719_v28 }
  0x49   :  { %1582 = vmatpush3.bf16.msra.mxu1 %v1718_v27 }
  0x4a   :  { %1583 = vmatprep.subr.bf16.mxu1 %v1721_v30 }
  0x4b   :  { %1562 = vmatpush3.bf16.msra.mxu0 %v1720_v29 }
  0x4c   :  { %1563 = vmatprep.subr.bf16.mxu0 %v1723_v32 }
  0x4d   :  { %1584 = vmatpush3.bf16.msra.mxu1 %v1722_v31 }
  0x4e   :  { %1585 = vmatprep.subr.bf16.mxu1 %v1725_v34 }
  0x4f   :  { %1564 = vmatpush3.bf16.msra.mxu0 %v1724_v33 }
  0x50   :  { %1565 = vmatprep.subr.bf16.mxu0 %v1727_v36 }
  0x51   :  { %1586 = vmatpush3.bf16.msra.mxu1 %v1726_v35 }
  0x52   :  { %1587 = vmatprep.subr.bf16.mxu1 %v1729_v38 }
  0x53   :  { %1566 = vmatpush3.bf16.msra.mxu0 %v1728_v37 }
  0x54   :  { %1567 = vmatprep.subr.bf16.mxu0 %v1731_v40 }
  0x55   :  { %1588 = vmatpush3.bf16.msra.mxu1 %v1730_v39 }
  0x56   :  { %1589 = vmatprep.subr.bf16.mxu1 %v1733_v43 }
  0x57   :  { %1568 = vmatpush3.bf16.msra.mxu0 %v1732_v42 }
  0x58   :  { %1569 = vmatprep.subr.bf16.mxu0 %v1735_v45 }
  0x59   :  { %1590 = vmatpush3.bf16.msra.mxu1 %v1734_v44 }
  0x5a   :  { %1591 = vmatprep.subr.bf16.mxu1 %v1737_v48 }
  0x5b   :  { %1570 = vmatpush3.bf16.msra.mxu0 %v1736_v47 }
  0x5c   :  { %1571 = vmatprep.subr.bf16.mxu0 %v1739_v50 }
  0x5d   :  { %13 = vsyncpa [#allocation5], 0  ;;  %1592 = vmatpush3.bf16.msra.mxu1 %v1738_v51  ;;  %v1742_v58 = vld [vmem:[%s2222_s1 + $0x2b8] sm:$0xff]   ;;  %1156 = vmatprep.mubr.bf16.mxu1 %v319_v56  ;;  %v281_v59 = vcombine.high %v26_v46, %v26_v46  ;;  %v1744_v60 = vld [vmem:[%s2222_s1 + $0x300] sm:$0xff]   ;;  %v1807_v61 = vmov 0.0   ;;  %v318_v62 = vcombine.high %v303_v57, %v303_v57  ;;  %vm1808_vm0 = vmmov 0  }
  0x5e   :  { %1593 = vmatprep.subr.bf16.mxu1 %v1741_v53  ;;  %v1745_v0 = vld [vmem:[%s2222_s1 + $0x308] sm:$0xff]   ;;  %vm920_vm1 = vcmask 261120   ;;  %v1746_v2 = vld [vmem:[%s2224_s3] sm:$0xff]   ;;  %v1748_v4 = vld [vmem:[%s2224_s3 + $0x10] sm:$0xff]   ;;  %vm1318_vm2 = vcmask 74752   ;;  %s1809_s20 = smov [#allocation4]  }
  0x5f   :  { %1572 = vmatpush3.bf16.msra.mxu0 %v1740_v54  ;;  %v295_v63 = vrot.slane %v281_v59, %v1951_v41  ;;  %v1747_v3 = vld [vmem:[%s2224_s3 + $0x8] sm:$0xff]   ;;  %v1750_v5 = vld [vmem:[%s2224_s3 + $0x20] sm:$0xff]   ;;  %v1752_v7 = vld [vmem:[%s2224_s3 + $0x30] sm:$0xff]   ;;  %s1348_s21 = sshll.u32 %s1809_s20, 4  ;;  %s1349_s21 = int_to_ptr.vmem [resolvable:$true] %s1348_s21 }
  0x60   :  { %1613 = vmatprep.subr.bf16.mxu0 %v1807_v61  ;;  %v1751_v6 = vld [vmem:[%s2224_s3 + $0x28] sm:$0xff]   ;;  %v1753_v8 = vld [vmem:[%s2224_s3 + $0x38] sm:$0xff]   ;;  %v1360_v10 = vld [vmem:[%s2223_s2] ss:$0 sm:$0xff]  ;;  %p1763_p1 = scmp.lt.s32.totalorder %s1349_s21, %s1349_s21 }
  0x61   :  { %1594 = vmatpush3.bf16.msra.mxu1 %v1742_v58  ;;  %v310_v1 = vrot.slane %v295_v63, %v1951_v41  ;;  %v1749_v41 = vld [vmem:[%s2224_s3 + $0x18] sm:$0xff]   ;;  %v1460_v54 = vld [vmem:[%s2225_s4] ss:$0 sm:$0xff]  ;;  %s1758_s4 = scalar_lea.vmem %s1349_s21, 32 }
  0x62   :  { %1117 = vmatmul.mubr.bf16.vlgmr.msra.gmra.mrb[8].mxu0 %v303_v57  ;;  %1621 = vmatprep.subr.bf16.mxu1 %v1807_v61  ;;  %p1759_p0 = scmp.ne.s32.totalorder %s1349_s21, %s1758_s4  ;;  %p1764_p2 = scmp.lt.s32.totalorder %s1758_s4, %s1758_s4 }
  0x63   :  { %1614 = vmatpush3.bf16.msra.mxu0 %v1744_v60  ;;  %1617 = vmatprep.mubr.msk.bf16.mxu0 %vm1808_vm0, %v1807_v61 }
  0x64   :  { %1157 = vmatmul.mubr.bf16.vlgmr.msra.gmra.mrb[8].mxu1 %v318_v62  ;;  %1615 = vmatprep.subr.bf16.mxu0 %v1807_v61  ;;  %p1765_p3 = por %p1764_p2, %p1763_p1 }
  0x65   :  { %1637 = vmatprep.mubr.msk.bf16.mxu1 %vm1808_vm0, %v1807_v61  ;;  %1622 = vmatpush3.bf16.msra.mxu1 %v1746_v2 }
  0x66   :  { %1623 = vmatprep.subr.bf16.mxu1 %v1807_v61  ;;  %p1766_p4 = pnand %p1765_p3, %p1759_p0 }
  0x67   :  { %1616 = vmatpush3.bf16.msra.mxu0 %v1745_v0 }
  0x69   :  { %1624 = vmatpush3.bf16.msra.mxu1 %v1747_v3 }
  0x6a   :  { %1618 = vmatmul.mubr.msk.bf16.vlgmr.msra.gmra.mrb[12].mxu0 %vm920_vm1, %v310_v1  ;;  %1625 = vmatprep.subr.bf16.mxu1 %v1807_v61 }
  0x6d   :  { %1626 = vmatpush3.bf16.msra.mxu1 %v1748_v4 }
  0x6e   :  { %1627 = vmatprep.subr.bf16.mxu1 %v1807_v61 }
  0x71   :  { %1628 = vmatpush3.bf16.msra.mxu1 %v1749_v41 }
  0x72   :  { %1629 = vmatprep.subr.bf16.mxu1 %v1807_v61 }
  0x75   :  { %1630 = vmatpush3.bf16.msra.mxu1 %v1750_v5 }
  0x76   :  { %1631 = vmatprep.subr.bf16.mxu1 %v1807_v61 }
  0x79   :  { %1632 = vmatpush3.bf16.msra.mxu1 %v1751_v6 }
  0x7a   :  { %1633 = vmatprep.subr.bf16.mxu1 %v1807_v61 }
  0x7d   :  { %1634 = vmatpush3.bf16.msra.mxu1 %v1752_v7 }
  0x7e   :  { %1635 = vmatprep.subr.bf16.mxu1 %v1807_v61 }
  0x81   :  { %1636 = vmatpush3.bf16.msra.mxu1 %v1753_v8 }
  0xf5   :  { %v1485_v9 = vpop.f32.mrb[0].mxu0 }
  0xf6   :  { %v1486_v11 = vpop.f32.mrb[1].mxu0 }
  0xf7   :  { %v1487_v12 = vadd.f32 %v1486_v11, %v1485_v9  ;;  %v1488_v13 = vpop.f32.mrb[2].mxu0  ;;  %v1507_v14 = vpop.f32.mrb[0].mxu1 }
  0xf8   :  { %v1489_v15 = vpop.f32.mrb[3].mxu0  ;;  %v1508_v16 = vpop.f32.mrb[1].mxu1 }
  0xf9   :  { %v959_v17 = vadd.f32 %v1487_v12, %v1360_v10  ;;  %v1509_v18 = vadd.f32 %v1508_v16, %v1507_v14  ;;  %v1510_v19 = vpop.f32.mrb[2].mxu1 }
  0xfa   :  { %v1511_v20 = vpop.f32.mrb[3].mxu1 }
  0xfb   :  { %v999_v21 = vadd.f32 %v1509_v18, %v959_v17 }
 0x115   :  { %v1529_v22 = vpop.f32.mrb[4].mxu0 }
 0x116   :  { %v1530_v23 = vpop.f32.mrb[5].mxu0 }
 0x117   :  { %v1531_v24 = vadd.f32 %v1530_v23, %v1529_v22  ;;  %v1532_v25 = vpop.f32.mrb[6].mxu0  ;;  %v1551_v26 = vpop.f32.mrb[4].mxu1 }
 0x118   :  { %v1533_v27 = vpop.f32.mrb[7].mxu0  ;;  %v1552_v28 = vpop.f32.mrb[5].mxu1 }
 0x119   :  { %v1039_v29 = vadd.f32 %v1531_v24, %v999_v21  ;;  %v1553_v30 = vadd.f32 %v1552_v28, %v1551_v26  ;;  %v1554_v31 = vpop.f32.mrb[6].mxu1 }
 0x11a   :  { %v1555_v32 = vpop.f32.mrb[7].mxu1 }
 0x11b   :  { %v1079_v33 = vadd.f32 %v1553_v30, %v1039_v29 }
 0x135   :  { %v1573_v34 = vpop.f32.mrb[8].mxu0 }
 0x136   :  { %v1574_v35 = vpop.f32.mrb[9].mxu0 }
 0x137   :  { %v1575_v36 = vadd.f32 %v1574_v35, %v1573_v34  ;;  %v1595_v37 = vpop.f32.mrb[8].mxu1  ;;  %v1576_v38 = vpop.f32.mrb[10].mxu0 }
 0x138   :  { %v1596_v39 = vpop.f32.mrb[9].mxu1  ;;  %v1577_v40 = vpop.f32.mrb[11].mxu0 }
 0x139   :  { %v1119_v42 = vadd.f32 %v1575_v36, %v1079_v33  ;;  %v1597_v43 = vadd.f32 %v1596_v39, %v1595_v37  ;;  %v1598_v44 = vpop.f32.mrb[10].mxu1 }
 0x13a   :  { %v1599_v45 = vpop.f32.mrb[11].mxu1 }
 0x13b   :  { %v1159_v46 = vadd.f32 %v1597_v43, %v1119_v42 }
 0x13d   :  { %v1198_v47 = vpop.f32.mrb[12].mxu0 }
 0x13e   :  { %v1199_v48 = vadd.f32 %v1198_v47, %v1159_v46  ;;  %v1619_v49 = vpop.f32.mrb[13].mxu0 }
 0x13f   :  { %v1201_v50 = vpop.f32.mrb[14].mxu0 }
 0x140   :  { %v1204_v51 = vmax.f32 %v1199_v48, 0.0  ;;  %v1620_v52 = vpop.f32.mrb[15].mxu0 }
 0x142   :  { %v1206_v53 = vpack.c.bf16 %v1204_v51, %v1204_v51  ;;  %1205 = vst [vmem:[#allocation4] sm:$0x3] %v1204_v51 }
 0x144   :  { %1638 = vmatmul.mubr.bf16.vlgmr.msra.gmra.mrb[12].mxu1 %v1206_v53 }
 0x217   :  { %v1312_v55 = vpop.f32.mrb[12].mxu1 }
 0x218   :  { %v1313_v56 = vadd.f32 %v1460_v54, %v1312_v55  ;;  %v1639_v57 = vpop.f32.mrb[13].mxu1 }
 0x219   :  { %v1315_v58 = vpop.f32.mrb[14].mxu1 }
 0x21a   :  { %v1640_v59 = vpop.f32.mrb[15].mxu1  ;;  %v1319_v60 = vsel %vm1318_vm2, %v1313_v56, -inf }
 0x21b   :  { %1320 = vmax.xlane.f32.xlu0 %v1319_v60 }
 0x2a8   :  { %v1321_v61 = vpop.xlane.xlu0 %1320 }
 0x2a9   :  { %v1322_v62 = vsub.f32 %v1313_v56, %v1321_v61 }
 0x2ab   :  { %v1323_v63 = vmul.f32 1.442695, %v1322_v62 }
 0x2ad   :  { %1754 = vpow2.f32 %v1323_v63 }
 0x2b7   :  { %v1755_v0 = vpop.eup %1754 }
 0x2b8   :  { %v1325_v1 = vsel %vm1318_vm2, %v1755_v0, 0.0 }
 0x2b9   :  { %1326 = vadd.xlane.f32.xlu0 %v1325_v1 }
 0x2ba   :  { %1769 = shalt.err (!%p1766_p4)
}
 0x2bb   :  { %s1770_s24 = scalar_lea.hbm %s2227_s6, 32 }
 0x2bc   :  { %p1771_p5 = scmp.ne.s32.totalorder %s2227_s6, %s1770_s24  ;;  %p1774_p6 = scmp.lt.u32.totalorder %s1770_s24, %s2227_s6 }
 0x2be   :  { %p1776_p7 = pnand %p1774_p6, %p1771_p5 }
 0x2c0   :  { %1779 = shalt.err (!%p1776_p7)
}
 0x2c1   :  { %1351 = dma.vmem_to_hbm [thread:$0]  %s1349_s21, 32, %s2227_s6, [#allocation5]  }
 0x2c2   :  { %s1810_s7 = smov [#allocation2]  }
 0x2c3   :  { %s1338_s1 = sshll.u32 %s1810_s7, 4  ;;  %s1339_s1 = int_to_ptr.vmem [resolvable:$true] %s1338_s1 }
 0x2c4   :  { %s1780_s8 = scalar_lea.vmem %s1339_s1, 32  ;;  %p1785_p9 = scmp.lt.s32.totalorder %s1339_s1, %s1339_s1 }
 0x2c5   :  { %p1781_p8 = scmp.ne.s32.totalorder %s1339_s1, %s1780_s8  ;;  %p1786_p10 = scmp.lt.s32.totalorder %s1780_s8, %s1780_s8 }
 0x2c7   :  { %p1787_p11 = por %p1786_p10, %p1785_p9 }
 0x2c9   :  { %p1788_p12 = pnand %p1787_p11, %p1781_p8 }
 0x346   :  { %v1327_v2 = vpop.xlane.xlu0 %1326 }
 0x347   :  { %1756 = vlog2.f32 %v1327_v2 }
 0x351   :  { %v1757_v3 = vpop.eup %1756 }
 0x352   :  { %v1329_v4 = vmul.f32 0.6931472, %v1757_v3 }
 0x354   :  { %v1330_v41 = vsub.f32 %v1322_v62, %v1329_v4 }
 0x356   :  { %1331 = vst.msk [vmem:[#allocation2] sm:$0x3] %vm1318_vm2, %v1330_v41 }
 0x357   :  { %1791 = shalt.err (!%p1788_p12)
}
 0x358   :  { %s1792_s6 = scalar_lea.hbm %s2226_s5, 32 }
 0x359   :  { %p1793_p13 = scmp.ne.s32.totalorder %s2226_s5, %s1792_s6  ;;  %p1796_p0 = scmp.lt.u32.totalorder %s1792_s6, %s2226_s5 }
 0x35b   :  { %p1798_p1 = pnand %p1796_p0, %p1793_p13 }
 0x35d   :  { %1801 = shalt.err (!%p1798_p1)
}
 0x35e   :  { %1341 = dma.vmem_to_hbm [thread:$0]  %s1339_s1, 32, %s2226_s5, [#allocation3]  }
 0x35f   :  { %1802 = dma.done.wait [#allocation3], 32  }
 0x360   :  { %1803 = vsyncadd [#allocation3], 4294967264 }
 0x361   :  { %1804 = dma.done.wait [#allocation5], 32  }
 0x362   :  { %1805 = vsyncadd [#allocation5], 4294967264 }
 0x363   :  { %1358 = vsyncpa [#allocation3], 1 }
 0x364   :  { %1359 = vsyncpa [#allocation5], 1 }

</bundles_post_ra>
